<compile_context>
chip_gen: v7x
topology: tpu7x:2x2x1
jax: 0.10.0
libtpu: 0.0.40
codegen_flags: <defaults>
</compile_context>

<pallas_src>
import functools

import jax
import jax.numpy as jnp
import numpy as np
from jax.experimental import pallas as pl
from jax.experimental.pallas import tpu as pltpu


def _round_up(x, m):
    return ((x + m - 1) // m) * m


def _pick_batch_tile(B, batch_tile):
    """Batch sits on the lane axis, so tiles are multiples of 128 (or the whole
    padded batch when B <= 128).  Minimize zero padding first, then prefer the
    largest tile that still leaves >= 2 grid steps (v7x megacore)."""
    if B <= 128:
        return _round_up(B, 8)
    batch_tile = max(128, _round_up(batch_tile, 128))
    best_tb = 128
    best_pad = _round_up(B, 128)
    for tb in range(256, batch_tile + 1, 128):
        pad = _round_up(B, tb)
        if pad < best_pad or (pad == best_pad and pad // tb >= 2):
            best_tb, best_pad = tb, pad
    return best_tb


def cnn_kernel(x_ref, wc_ref, wl_ref, bl_ref, o_ref, pool_ref, *, L, OC):
    # x_ref   : (L+1, 2*C_in, TB)  tap-fused input, batch on the lane axis
    # wc_ref  : (OC, 2*C_in)       fused conv weight [W_tap0 | W_tap1]
    # wl_ref  : (OUT, L*OC)        linear weight, columns in the pool's t-major order
    # bl_ref  : (OUT, 1)           linear bias with the conv bias pre-folded in
    # o_ref   : (OUT, TB)          transposed output tile
    # pool_ref: VMEM scratch (L*OC, TB) -- transposed, flattened MaxPool output
    wc = wc_ref[...]

    # Conv1d(in_channel, 64, kernel_size=2, stride=1, padding=1): L+1 independent
    # (OC, 2C)@(2C, TB) dots with the batch on the full-width lane axis.  No
    # loop-carried value and no bias add here (bias folded into bl_ref; valid
    # since max(a+b, c+b) == max(a, c) + b and eval-mode dropout is identity).
    ys = [jnp.dot(wc, x_ref[t], preferred_element_type=jnp.float32)
          for t in range(L + 1)]

    # MaxPool1d(kernel_size=2, stride=1): pool_T[t*OC + c, b] = max over positions
    # t, t+1.  Each store is a full-lane-width slab at an 8-aligned sublane offset.
    for t in range(L):
        pool_ref[t * OC:(t + 1) * OC, :] = (
            jnp.maximum(ys[t], ys[t + 1]).astype(pool_ref.dtype))

    # TODO(synk): Dropout(0.5) implemented as inference-mode identity (no RNG mask).

    # Linear(L*64 -> 512), transposed: out^T = wl2T @ pool_T, one K = L*64 MXU
    # contraction with M = 512 and N = TB.
    o_ref[...] = (jnp.dot(wl_ref[...], pool_ref[...],
                          preferred_element_type=jnp.float32)
                  + bl_ref[...]).astype(o_ref.dtype)


def cnn_module_forward(x, conv_w, conv_b, lin_w, lin_b, *, batch_tile=256,
                       use_bf16=False):
    """x: (B, L, C_in) float32. conv_w: (64, C_in, 2), conv_b: (64,),
    lin_w: (512, 64*L), lin_b: (512,).  Returns (B, 512) float32.
    use_bf16=True casts the linear weight and pool scratch to bfloat16
    (full-rate MXU on v6e/v7x); accumulation stays float32."""
    B, L, C = x.shape
    OC = conv_w.shape[0]                 # 64
    OUT = lin_w.shape[0]                 # 512
    assert lin_w.shape[1] == OC * L

    # --- wrapper-side layout prep (no compute hoisted) ----------------------
    # Fused conv weight for left-multiplication: y_T[t] = wcT @ x_T[t].
    wcT = jnp.concatenate([conv_w[:, :, 0], conv_w[:, :, 1]], axis=1)    # (OC, 2C)
    # PyTorch flattens the pool (B, OC, L) channel-major (index c*L + t); the
    # kernel's transposed pool is t-major (row t*OC + c), so permute:
    # wl2T[o, t*OC + c] = lin_w[o, c*L + t].
    wl2T = jnp.transpose(lin_w.reshape(OUT, OC, L), (0, 2, 1)).reshape(OUT, L * OC)
    # Fold the conv bias into the linear bias: every pool row carries +conv_b[c],
    # contributing wl2T @ tile(conv_b, L) to every output.
    bl_eff = (lin_b + wl2T @ jnp.tile(conv_b, L)).reshape(OUT, 1)        # (OUT, 1)
    if use_bf16:
        wl2T = wl2T.astype(jnp.bfloat16)
    pool_dtype = jnp.bfloat16 if use_bf16 else jnp.float32

    # Conv1d padding=1 -> zero-pad the length axis; fuse the two kernel taps
    # channel-wise (K = 2*C_in) and put the batch on the trailing lane axis.
    x_pad = jnp.pad(x, ((0, 0), (1, 1), (0, 0)))                          # (B, L+2, C)
    x_cat = jnp.concatenate([x_pad[:, 0:L + 1, :],
                             x_pad[:, 1:L + 2, :]], axis=-1)              # (B, L+1, 2C)
    x_t = jnp.transpose(x_cat, (1, 2, 0))                                 # (L+1, 2C, B)

    TB = _pick_batch_tile(B, batch_tile)
    B_pad = _round_up(B, TB)
    if B_pad != B:
        x_t = jnp.pad(x_t, ((0, 0), (0, 0), (0, B_pad - B)))

    grid = (B_pad // TB,)
    flops = 2 * B_pad * ((L + 1) * (2 * C) * OC + L * OC * OUT)
    bytes_accessed = int(4 * x_t.size + 4 * wcT.size + 4 * bl_eff.size
                         + wl2T.size * wl2T.dtype.itemsize + 4 * OUT * B_pad)

    # Explicit VMEM budget.  NOTE: for large L the grid-invariant wl2T should
    # additionally be single-buffered (pipeline_mode=pl.Buffered(1)) or K-tiled
    # on a trailing 'arbitrary' grid axis; unnecessary at these shapes.
    lane = max(TB, 128)
    est = (2 * (L + 1) * _round_up(2 * C, 8) * lane * 4                  # x (double-buffered)
           + 2 * (wcT.size * 4 + wl2T.size * wl2T.dtype.itemsize + bl_eff.size * 4)
           + L * OC * lane * jnp.dtype(pool_dtype).itemsize              # pool scratch
           + (L + 1) * OC * lane * 4                                     # conv intermediates
           + 2 * OUT * lane * 4)                                         # output (double-buffered)
    vmem_limit = int(min(max(2 * est, 32 * 1024 * 1024), 56 * 1024 * 1024))

    out_t = pl.pallas_call(
        functools.partial(cnn_kernel, L=L, OC=OC),
        out_shape=jax.ShapeDtypeStruct((OUT, B_pad), jnp.float32),
        grid_spec=pltpu.PrefetchScalarGridSpec(
            num_scalar_prefetch=0,
            grid=grid,
            in_specs=[
                pl.BlockSpec((L + 1, 2 * C, TB), lambda i: (0, 0, i)),
                pl.BlockSpec((OC, 2 * C), lambda i: (0, 0)),
                pl.BlockSpec((OUT, L * OC), lambda i: (0, 0)),
                pl.BlockSpec((OUT, 1), lambda i: (0, 0)),
            ],
            out_specs=pl.BlockSpec((OUT, TB), lambda i: (0, i)),
            scratch_shapes=[pltpu.VMEM((L * OC, TB), pool_dtype)],
        ),
        compiler_params=pltpu.CompilerParams(
            dimension_semantics=("parallel",),
            vmem_limit_bytes=vmem_limit),
        cost_estimate=pl.CostEstimate(flops=flops, transcendentals=0,
                                      bytes_accessed=bytes_accessed),
    )(x_t, wcT, wl2T, bl_eff)
    # Kernel writes out^T (OUT, B_pad); transpose back and drop batch padding.
    return out_t.T[:B]


def cnn_module_reference(x, conv_w, conv_b, lin_w, lin_b):
    """Pure-JAX mirror of the PyTorch forward (eval-mode dropout)."""
    B, L, C = x.shape
    x_pad = jnp.pad(x, ((0, 0), (1, 1), (0, 0)))
    w0 = conv_w[:, :, 0].T
    w1 = conv_w[:, :, 1].T
    y = (jnp.einsum('blc,co->blo', x_pad[:, 0:L + 1], w0)
         + jnp.einsum('blc,co->blo', x_pad[:, 1:L + 2], w1)
         + conv_b[None, None, :])                          # (B, L+1, 64)
    pool = jnp.maximum(y[:, 0:L], y[:, 1:L + 1])           # (B, L, 64)
    flat = jnp.transpose(pool, (0, 2, 1)).reshape(B, -1)   # PyTorch .view order
    return flat @ lin_w.T + lin_b[None, :]


if __name__ == "__main__":
    # Small shapes consistent with the module: batch=2, seq len l=8, amino_dim=4.
    B, L, C_in = 2, 8, 4
    OC, OUT = 64, 512

    key = jax.random.PRNGKey(0)
    k1, k2, k3, k4, k5 = jax.random.split(key, 5)
    x = jax.random.normal(k1, (B, L, C_in), dtype=jnp.float32)
    conv_w = jax.random.normal(k2, (OC, C_in, 2), dtype=jnp.float32) * 0.1
    conv_b = jax.random.normal(k3, (OC,), dtype=jnp.float32) * 0.1
    lin_w = jax.random.normal(k4, (OUT, OC * L), dtype=jnp.float32) * 0.05
    lin_b = jax.random.normal(k5, (OUT,), dtype=jnp.float32) * 0.05

    out = cnn_module_forward(x, conv_w, conv_b, lin_w, lin_b)
    jax.block_until_ready(out)
    ref = cnn_module_reference(x, conv_w, conv_b, lin_w, lin_b)
    np.testing.assert_allclose(np.asarray(out), np.asarray(ref),
                               rtol=1e-3, atol=1e-3)

    # Multi-step batch grid (TB=128, B_pad=256, grid=(2,)) with a padded tail.
    B2 = 200
    x2 = jax.random.normal(jax.random.PRNGKey(1), (B2, L, C_in), dtype=jnp.float32)
    out2 = cnn_module_forward(x2, conv_w, conv_b, lin_w, lin_b)
    jax.block_until_ready(out2)
    ref2 = cnn_module_reference(x2, conv_w, conv_b, lin_w, lin_b)
    np.testing.assert_allclose(np.asarray(out2), np.asarray(ref2),
                               rtol=1e-3, atol=1e-3)

    # bf16 weight / pool path (full-rate MXU on v6e/v7x); looser tolerance.
    out3 = cnn_module_forward(x, conv_w, conv_b, lin_w, lin_b, use_bf16=True)
    jax.block_until_ready(out3)
    np.testing.assert_allclose(np.asarray(out3), np.asarray(ref),
                               rtol=5e-2, atol=5e-2)

    print("KERNEL_OK")
</pallas_src>

<mosaic_0001>
module attributes {stable_mosaic.version = 11 : i64} {
  func.func @cnn_kernel(%arg0: i32, %arg1: memref<9x8x8xf32, #tpu.memory_space<vmem>>, %arg2: memref<64x8xf32, #tpu.memory_space<vmem>>, %arg3: memref<512x512xf32, #tpu.memory_space<vmem>>, %arg4: memref<512x1xf32, #tpu.memory_space<vmem>>, %arg5: memref<512x8xf32, #tpu.memory_space<vmem>>, %arg6: memref<512x8xf32, #tpu.memory_space<vmem>>) attributes {dimension_semantics = [#tpu.dimension_semantics<parallel>], iteration_bounds = array<i64: 1>, scalar_prefetch = 0 : i64, scratch_operands = 1 : i64, tpu.core_type = #tpu.core_type<tc>, window_params = [{transform_indices = @transform_0, window_bounds = array<i64: 9, 8, 8>}, {pipeline_mode = #tpu.pipeline_mode<synchronous>, transform_indices = @transform_1, window_bounds = array<i64: 64, 8>}, {pipeline_mode = #tpu.pipeline_mode<synchronous>, transform_indices = @transform_2, window_bounds = array<i64: 512, 512>}, {pipeline_mode = #tpu.pipeline_mode<synchronous>, transform_indices = @transform_3, window_bounds = array<i64: 512, 1>}, {transform_indices = @transform_4, window_bounds = array<i64: 512, 8>}]} {
    %c0 = arith.constant 0 : index
    %c0_0 = arith.constant 0 : index
    %0 = vector.load %arg2[%c0, %c0_0] : memref<64x8xf32, #tpu.memory_space<vmem>>, vector<64x8xf32>
    %c0_1 = arith.constant 0 : index
    %c0_2 = arith.constant 0 : index
    %c0_3 = arith.constant 0 : index
    %1 = vector.load %arg1[%c0_1, %c0_2, %c0_3] : memref<9x8x8xf32, #tpu.memory_space<vmem>>, vector<1x8x8xf32>
    %2 = vector.shape_cast %1 : vector<1x8x8xf32> to vector<8x8xf32>
    %cst = arith.constant dense<0.000000e+00> : vector<64x8xf32>
    %3 = tpu.matmul %0, %2, %cst {dimension_numbers = #tpu.dot_dimension_numbers<[1], [0], [0], [1], [0, 0, 1, 1], [], []>} : vector<64x8xf32>, vector<8x8xf32>, vector<64x8xf32> -> vector<64x8xf32>
    %c1 = arith.constant 1 : index
    %c0_4 = arith.constant 0 : index
    %c0_5 = arith.constant 0 : index
    %4 = vector.load %arg1[%c1, %c0_4, %c0_5] : memref<9x8x8xf32, #tpu.memory_space<vmem>>, vector<1x8x8xf32>
    %5 = vector.shape_cast %4 : vector<1x8x8xf32> to vector<8x8xf32>
    %cst_6 = arith.constant dense<0.000000e+00> : vector<64x8xf32>
    %6 = tpu.matmul %0, %5, %cst_6 {dimension_numbers = #tpu.dot_dimension_numbers<[1], [0], [0], [1], [0, 0, 1, 1], [], []>} : vector<64x8xf32>, vector<8x8xf32>, vector<64x8xf32> -> vector<64x8xf32>
    %c2 = arith.constant 2 : index
    %c0_7 = arith.constant 0 : index
    %c0_8 = arith.constant 0 : index
    %7 = vector.load %arg1[%c2, %c0_7, %c0_8] : memref<9x8x8xf32, #tpu.memory_space<vmem>>, vector<1x8x8xf32>
    %8 = vector.shape_cast %7 : vector<1x8x8xf32> to vector<8x8xf32>
    %cst_9 = arith.constant dense<0.000000e+00> : vector<64x8xf32>
    %9 = tpu.matmul %0, %8, %cst_9 {dimension_numbers = #tpu.dot_dimension_numbers<[1], [0], [0], [1], [0, 0, 1, 1], [], []>} : vector<64x8xf32>, vector<8x8xf32>, vector<64x8xf32> -> vector<64x8xf32>
    %c3 = arith.constant 3 : index
    %c0_10 = arith.constant 0 : index
    %c0_11 = arith.constant 0 : index
    %10 = vector.load %arg1[%c3, %c0_10, %c0_11] : memref<9x8x8xf32, #tpu.memory_space<vmem>>, vector<1x8x8xf32>
    %11 = vector.shape_cast %10 : vector<1x8x8xf32> to vector<8x8xf32>
    %cst_12 = arith.constant dense<0.000000e+00> : vector<64x8xf32>
    %12 = tpu.matmul %0, %11, %cst_12 {dimension_numbers = #tpu.dot_dimension_numbers<[1], [0], [0], [1], [0, 0, 1, 1], [], []>} : vector<64x8xf32>, vector<8x8xf32>, vector<64x8xf32> -> vector<64x8xf32>
    %c4 = arith.constant 4 : index
    %c0_13 = arith.constant 0 : index
    %c0_14 = arith.constant 0 : index
    %13 = vector.load %arg1[%c4, %c0_13, %c0_14] : memref<9x8x8xf32, #tpu.memory_space<vmem>>, vector<1x8x8xf32>
    %14 = vector.shape_cast %13 : vector<1x8x8xf32> to vector<8x8xf32>
    %cst_15 = arith.constant dense<0.000000e+00> : vector<64x8xf32>
    %15 = tpu.matmul %0, %14, %cst_15 {dimension_numbers = #tpu.dot_dimension_numbers<[1], [0], [0], [1], [0, 0, 1, 1], [], []>} : vector<64x8xf32>, vector<8x8xf32>, vector<64x8xf32> -> vector<64x8xf32>
    %c5 = arith.constant 5 : index
    %c0_16 = arith.constant 0 : index
    %c0_17 = arith.constant 0 : index
    %16 = vector.load %arg1[%c5, %c0_16, %c0_17] : memref<9x8x8xf32, #tpu.memory_space<vmem>>, vector<1x8x8xf32>
    %17 = vector.shape_cast %16 : vector<1x8x8xf32> to vector<8x8xf32>
    %cst_18 = arith.constant dense<0.000000e+00> : vector<64x8xf32>
    %18 = tpu.matmul %0, %17, %cst_18 {dimension_numbers = #tpu.dot_dimension_numbers<[1], [0], [0], [1], [0, 0, 1, 1], [], []>} : vector<64x8xf32>, vector<8x8xf32>, vector<64x8xf32> -> vector<64x8xf32>
    %c6 = arith.constant 6 : index
    %c0_19 = arith.constant 0 : index
    %c0_20 = arith.constant 0 : index
    %19 = vector.load %arg1[%c6, %c0_19, %c0_20] : memref<9x8x8xf32, #tpu.memory_space<vmem>>, vector<1x8x8xf32>
    %20 = vector.shape_cast %19 : vector<1x8x8xf32> to vector<8x8xf32>
    %cst_21 = arith.constant dense<0.000000e+00> : vector<64x8xf32>
    %21 = tpu.matmul %0, %20, %cst_21 {dimension_numbers = #tpu.dot_dimension_numbers<[1], [0], [0], [1], [0, 0, 1, 1], [], []>} : vector<64x8xf32>, vector<8x8xf32>, vector<64x8xf32> -> vector<64x8xf32>
    %c7 = arith.constant 7 : index
    %c0_22 = arith.constant 0 : index
    %c0_23 = arith.constant 0 : index
    %22 = vector.load %arg1[%c7, %c0_22, %c0_23] : memref<9x8x8xf32, #tpu.memory_space<vmem>>, vector<1x8x8xf32>
    %23 = vector.shape_cast %22 : vector<1x8x8xf32> to vector<8x8xf32>
    %cst_24 = arith.constant dense<0.000000e+00> : vector<64x8xf32>
    %24 = tpu.matmul %0, %23, %cst_24 {dimension_numbers = #tpu.dot_dimension_numbers<[1], [0], [0], [1], [0, 0, 1, 1], [], []>} : vector<64x8xf32>, vector<8x8xf32>, vector<64x8xf32> -> vector<64x8xf32>
    %c8 = arith.constant 8 : index
    %c0_25 = arith.constant 0 : index
    %c0_26 = arith.constant 0 : index
    %25 = vector.load %arg1[%c8, %c0_25, %c0_26] : memref<9x8x8xf32, #tpu.memory_space<vmem>>, vector<1x8x8xf32>
    %26 = vector.shape_cast %25 : vector<1x8x8xf32> to vector<8x8xf32>
    %cst_27 = arith.constant dense<0.000000e+00> : vector<64x8xf32>
    %27 = tpu.matmul %0, %26, %cst_27 {dimension_numbers = #tpu.dot_dimension_numbers<[1], [0], [0], [1], [0, 0, 1, 1], [], []>} : vector<64x8xf32>, vector<8x8xf32>, vector<64x8xf32> -> vector<64x8xf32>
    %28 = arith.maximumf %3, %6 : vector<64x8xf32>
    %c0_28 = arith.constant 0 : index
    %c0_29 = arith.constant 0 : index
    %29 = vector.load %arg6[%c0_28, %c0_29] : memref<512x8xf32, #tpu.memory_space<vmem>>, vector<64x8xf32>
    tpu.vector_store %arg6[%c0_28, %c0_29], %28 {strides = array<i32>} : memref<512x8xf32, #tpu.memory_space<vmem>>, vector<64x8xf32>,
    %30 = arith.maximumf %6, %9 : vector<64x8xf32>
    %c64 = arith.constant 64 : index
    %c0_30 = arith.constant 0 : index
    %31 = vector.load %arg6[%c64, %c0_30] : memref<512x8xf32, #tpu.memory_space<vmem>>, vector<64x8xf32>
    tpu.vector_store %arg6[%c64, %c0_30], %30 {strides = array<i32>} : memref<512x8xf32, #tpu.memory_space<vmem>>, vector<64x8xf32>,
    %32 = arith.maximumf %9, %12 : vector<64x8xf32>
    %c128 = arith.constant 128 : index
    %c0_31 = arith.constant 0 : index
    %33 = vector.load %arg6[%c128, %c0_31] : memref<512x8xf32, #tpu.memory_space<vmem>>, vector<64x8xf32>
    tpu.vector_store %arg6[%c128, %c0_31], %32 {strides = array<i32>} : memref<512x8xf32, #tpu.memory_space<vmem>>, vector<64x8xf32>,
    %34 = arith.maximumf %12, %15 : vector<64x8xf32>
    %c192 = arith.constant 192 : index
    %c0_32 = arith.constant 0 : index
    %35 = vector.load %arg6[%c192, %c0_32] : memref<512x8xf32, #tpu.memory_space<vmem>>, vector<64x8xf32>
    tpu.vector_store %arg6[%c192, %c0_32], %34 {strides = array<i32>} : memref<512x8xf32, #tpu.memory_space<vmem>>, vector<64x8xf32>,
    %36 = arith.maximumf %15, %18 : vector<64x8xf32>
    %c256 = arith.constant 256 : index
    %c0_33 = arith.constant 0 : index
    %37 = vector.load %arg6[%c256, %c0_33] : memref<512x8xf32, #tpu.memory_space<vmem>>, vector<64x8xf32>
    tpu.vector_store %arg6[%c256, %c0_33], %36 {strides = array<i32>} : memref<512x8xf32, #tpu.memory_space<vmem>>, vector<64x8xf32>,
    %38 = arith.maximumf %18, %21 : vector<64x8xf32>
    %c320 = arith.constant 320 : index
    %c0_34 = arith.constant 0 : index
    %39 = vector.load %arg6[%c320, %c0_34] : memref<512x8xf32, #tpu.memory_space<vmem>>, vector<64x8xf32>
    tpu.vector_store %arg6[%c320, %c0_34], %38 {strides = array<i32>} : memref<512x8xf32, #tpu.memory_space<vmem>>, vector<64x8xf32>,
    %40 = arith.maximumf %21, %24 : vector<64x8xf32>
    %c384 = arith.constant 384 : index
    %c0_35 = arith.constant 0 : index
    %41 = vector.load %arg6[%c384, %c0_35] : memref<512x8xf32, #tpu.memory_space<vmem>>, vector<64x8xf32>
    tpu.vector_store %arg6[%c384, %c0_35], %40 {strides = array<i32>} : memref<512x8xf32, #tpu.memory_space<vmem>>, vector<64x8xf32>,
    %42 = arith.maximumf %24, %27 : vector<64x8xf32>
    %c448 = arith.constant 448 : index
    %c0_36 = arith.constant 0 : index
    %43 = vector.load %arg6[%c448, %c0_36] : memref<512x8xf32, #tpu.memory_space<vmem>>, vector<64x8xf32>
    tpu.vector_store %arg6[%c448, %c0_36], %42 {strides = array<i32>} : memref<512x8xf32, #tpu.memory_space<vmem>>, vector<64x8xf32>,
    %c0_37 = arith.constant 0 : index
    %c0_38 = arith.constant 0 : index
    %44 = vector.load %arg3[%c0_37, %c0_38] : memref<512x512xf32, #tpu.memory_space<vmem>>, vector<512x512xf32>
    %c0_39 = arith.constant 0 : index
    %c0_40 = arith.constant 0 : index
    %45 = vector.load %arg6[%c0_39, %c0_40] : memref<512x8xf32, #tpu.memory_space<vmem>>, vector<512x8xf32>
    %cst_41 = arith.constant dense<0.000000e+00> : vector<512x8xf32>
    %46 = tpu.matmul %44, %45, %cst_41 {dimension_numbers = #tpu.dot_dimension_numbers<[1], [0], [0], [1], [0, 0, 1, 1], [], []>} : vector<512x512xf32>, vector<512x8xf32>, vector<512x8xf32> -> vector<512x8xf32>
    %c0_42 = arith.constant 0 : index
    %c0_43 = arith.constant 0 : index
    %47 = vector.load %arg4[%c0_42, %c0_43] : memref<512x1xf32, #tpu.memory_space<vmem>>, vector<512x1xf32>
    %48 = vector.broadcast %47 : vector<512x1xf32> to vector<512x8xf32>
    %49 = arith.addf %46, %48 : vector<512x8xf32>
    %c0_44 = arith.constant 0 : index
    %c0_45 = arith.constant 0 : index
    %50 = vector.load %arg5[%c0_44, %c0_45] : memref<512x8xf32, #tpu.memory_space<vmem>>, vector<512x8xf32>
    tpu.vector_store %arg5[%c0_44, %c0_45], %49 {strides = array<i32>} : memref<512x8xf32, #tpu.memory_space<vmem>>, vector<512x8xf32>,
    return
  }
  func.func @transform_0(%arg0: i32) -> (i32, i32, i32) {
    %c0_i32 = arith.constant 0 : i32
    %c0_i32_0 = arith.constant 0 : i32
    %c0_i32_1 = arith.constant 0 : i32
    return %c0_i32, %c0_i32_0, %arg0 : i32, i32, i32
  }
  func.func @transform_1(%arg0: i32) -> (i32, i32) {
    %c0_i32 = arith.constant 0 : i32
    %c0_i32_0 = arith.constant 0 : i32
    %c0_i32_1 = arith.constant 0 : i32
    return %c0_i32, %c0_i32_0 : i32, i32
  }
  func.func @transform_2(%arg0: i32) -> (i32, i32) {
    %c0_i32 = arith.constant 0 : i32
    %c0_i32_0 = arith.constant 0 : i32
    %c0_i32_1 = arith.constant 0 : i32
    return %c0_i32, %c0_i32_0 : i32, i32
  }
  func.func @transform_3(%arg0: i32) -> (i32, i32) {
    %c0_i32 = arith.constant 0 : i32
    %c0_i32_0 = arith.constant 0 : i32
    %c0_i32_1 = arith.constant 0 : i32
    return %c0_i32, %c0_i32_0 : i32, i32
  }
  func.func @transform_4(%arg0: i32) -> (i32, i32) {
    %c0_i32 = arith.constant 0 : i32
    %c0_i32_0 = arith.constant 0 : i32
    return %c0_i32, %arg0 : i32, i32
  }
}

</mosaic_0001>

<bundles_post_ra>
// kernel: tpu_custom_call.1
= control target key start
LH: loop header
LB: loop body
LE: loop exit
PB: predicated region body
PF: predicated region fallthrough
CT: control target
= control target key end

     0   :  { %9 = vsyncpa [#allocation4], 0  ;;  %s3273_s15 = smov [#allocation3]   ;;  %s4325_s0 = inlined_call_operand.vmem [shape: f32[9,8,8], index: 0, kind: input, shape index: {}]   ;;  %s4326_s1 = inlined_call_operand.vmem [shape: f32[64,8], index: 1, kind: input, shape index: {}]   ;;  %s4327_s2 = inlined_call_operand.hbm [shape: f32[512,512], index: 2, kind: input, shape index: {}]   ;;  %s4328_s3 = inlined_call_operand.vmem [shape: f32[512,1], index: 3, kind: input, shape index: {}]   ;;  %s4329_s4 = inlined_call_operand.vmem [shape: f32[512,8], index: 4, kind: output, shape index: {}]  }
   0x1   :  { %s19_s16 = sshll.u32 %s3273_s15, 4  ;;  %s3249_s19 = scalar_lea.hbm %s4327_s2, 32768  ;;  %s20_s16 = int_to_ptr.vmem [resolvable:$true] %s19_s16 }
   0x2   :  { %p3250_p0 = scmp.ne.s32.totalorder %s4327_s2, %s3249_s19  ;;  %p3253_p1 = scmp.lt.u32.totalorder %s3249_s19, %s4327_s2 }
   0x4   :  { %p3255_p2 = pnand %p3253_p1, %p3250_p0 }
   0x6   :  { %3258 = shalt.err (!%p3255_p2)
}
   0x7   :  { %s3259_s24 = scalar_lea.vmem %s20_s16, 32768  ;;  %p3264_p4 = scmp.lt.s32.totalorder %s20_s16, %s20_s16 }
   0x8   :  { %p3260_p3 = scmp.ne.s32.totalorder %s20_s16, %s3259_s24  ;;  %p3265_p5 = scmp.lt.s32.totalorder %s3259_s24, %s3259_s24 }
   0xa   :  { %p3266_p6 = por %p3265_p5, %p3264_p4 }
   0xc   :  { %p3267_p7 = pnand %p3266_p6, %p3260_p3 }
   0xe   :  { %3270 = shalt.err (!%p3267_p7)
}
   0xf   :  { %s3274_s25 = smov 512   ;;  %s3275_s26 = smov 32  }
  0x10   :  { %25 = dma.hbm_to_vmem [thread:$0]  %s4327_s2, 32768, %s20_s16, [#allocation4], %s3274_s25, %s3274_s25, %s3275_s26  }
  0x11   :  { %3271 = dma.done.wait [#allocation4], 32768  }
  0x12   :  { %3272 = vsyncadd [#allocation4], 4294934528  ;;  %vm40_vm0 = vcmask 64512   ;;  %v39_v0 = vld [vmem:[%s4325_s0] sm:$0xff]  ;;  %v2705_v1 = vld [vmem:[%s4325_s0 + $0x8] sm:$0xff]  ;;  %v3276_v17 = vmov 0.0|0.0  }
  0x13   :  { %v3324_v2 = vld [vmem:[%s4326_s1] sm:$0xff]  ;;  %2858 = vmatprep.subr.mxu0 %v39_v0  ;;  %2872 = vmatprep.subr.mxu1 %v2705_v1  ;;  %v3329_v3 = vld [vmem:[%s4326_s1 + $0x8] sm:$0xff]  ;;  %v2714_v4 = vld [vmem:[%s4325_s0 + $0x10] sm:$0xff] }
  0x14   :  { %2859 = vmatpush3.msra.mxu0 %v39_v0  ;;  %2860 = vmatprep.mubr.msk.f32.mxu0 %vm40_vm0, %v3324_v2  ;;  %v2723_v5 = vld [vmem:[%s4325_s0 + $0x18] sm:$0xff]  ;;  %v3348_v6 = vld [vmem:[%s4326_s1 + $0x10] sm:$0xff]  ;;  %v3358_v8 = vld [vmem:[%s4326_s1 + $0x20] sm:$0xff] }
  0x15   :  { %2873 = vmatpush3.msra.mxu1 %v2705_v1  ;;  %2874 = vmatprep.mubr.msk.f32.mxu1 %vm40_vm0, %v3324_v2  ;;  %v3353_v7 = vld [vmem:[%s4326_s1 + $0x18] sm:$0xff]  ;;  %v2732_v9 = vld [vmem:[%s4325_s0 + $0x20] sm:$0xff]  ;;  %v2741_v10 = vld [vmem:[%s4325_s0 + $0x28] sm:$0xff] }
  0x16   :  { %2861 = vmatmul.mubr.msk.f32.vlgmr.msra.gmra.mrb[0].mxu0 %vm40_vm0, %v3329_v3  ;;  %2875 = vmatmul.mubr.msk.f32.vlgmr.msra.gmra.mrb[0].mxu1 %vm40_vm0, %v3329_v3  ;;  %v3381_v11 = vld [vmem:[%s4326_s1 + $0x28] sm:$0xff]  ;;  %v3386_v12 = vld [vmem:[%s4326_s1 + $0x30] sm:$0xff]  ;;  %v3399_v13 = vld [vmem:[%s4326_s1 + $0x38] sm:$0xff] }
  0x17   :  { %2886 = vmatprep.subr.mxu0 %v2714_v4  ;;  %2900 = vmatprep.subr.mxu1 %v2723_v5  ;;  %v2750_v14 = vld [vmem:[%s4325_s0 + $0x30] sm:$0xff]  ;;  %v2759_v15 = vld [vmem:[%s4325_s0 + $0x38] sm:$0xff]  ;;  %v2768_v16 = vld [vmem:[%s4325_s0 + $0x40] sm:$0xff] }
  0x18   :  { %2887 = vmatpush3.msra.mxu0 %v2714_v4  ;;  %2901 = vmatpush3.msra.mxu1 %v2723_v5  ;;  %v1155_v18 = vld [vmem:[#allocation3 + $0x8] sm:$0xff]  ;;  %v1157_v19 = vld [vmem:[#allocation3 + $0x18] sm:$0xff] }
  0x19   :  { %2863 = vmatprep.mubr.msk.f32.mxu0 %vm40_vm0, %v3348_v6  ;;  %2877 = vmatprep.mubr.msk.f32.mxu1 %vm40_vm0, %v3348_v6 }
  0x1a   :  { %2864 = vmatmul.mubr.msk.f32.gmra.mrb[2].mxu0 %vm40_vm0, %v3353_v7  ;;  %2878 = vmatmul.mubr.msk.f32.gmra.mrb[2].mxu1 %vm40_vm0, %v3353_v7 }
  0x1b   :  { %2866 = vmatprep.mubr.msk.f32.mxu0 %vm40_vm0, %v3358_v8  ;;  %2880 = vmatprep.mubr.msk.f32.mxu1 %vm40_vm0, %v3358_v8 }
  0x1c   :  { %2914 = vmatprep.subr.mxu0 %v2732_v9  ;;  %2928 = vmatprep.subr.mxu1 %v2741_v10 }
  0x1e   :  { %2867 = vmatmul.mubr.msk.f32.gmra.mrb[4].mxu0 %vm40_vm0, %v3381_v11  ;;  %2881 = vmatmul.mubr.msk.f32.gmra.mrb[4].mxu1 %vm40_vm0, %v3381_v11 }
  0x1f   :  { %2869 = vmatprep.mubr.msk.f32.mxu0 %vm40_vm0, %v3386_v12  ;;  %2883 = vmatprep.mubr.msk.f32.mxu1 %vm40_vm0, %v3386_v12 }
  0x22   :  { %2870 = vmatmul.mubr.msk.f32.gmra.mrb[6].mxu0 %vm40_vm0, %v3399_v13  ;;  %2884 = vmatmul.mubr.msk.f32.gmra.mrb[6].mxu1 %vm40_vm0, %v3399_v13 }
  0x23   :  { %2888 = vmatprep.mubr.msk.f32.mxu0 %vm40_vm0, %v3324_v2  ;;  %2902 = vmatprep.mubr.msk.f32.mxu1 %vm40_vm0, %v3324_v2 }
  0x26   :  { %2889 = vmatmul.mubr.msk.f32.vlgmr.msra.gmra.mrb[8].mxu0 %vm40_vm0, %v3329_v3  ;;  %2903 = vmatmul.mubr.msk.f32.vlgmr.msra.gmra.mrb[8].mxu1 %vm40_vm0, %v3329_v3 }
  0x27   :  { %2915 = vmatpush3.msra.mxu0 %v2732_v9  ;;  %2929 = vmatpush3.msra.mxu1 %v2741_v10 }
  0x28   :  { %2891 = vmatprep.mubr.msk.f32.mxu0 %vm40_vm0, %v3348_v6  ;;  %2905 = vmatprep.mubr.msk.f32.mxu1 %vm40_vm0, %v3348_v6 }
  0x29   :  { %2942 = vmatprep.subr.mxu0 %v2750_v14  ;;  %2956 = vmatprep.subr.mxu1 %v2759_v15 }
  0x2a   :  { %2892 = vmatmul.mubr.msk.f32.gmra.mrb[10].mxu0 %vm40_vm0, %v3353_v7  ;;  %2906 = vmatmul.mubr.msk.f32.gmra.mrb[10].mxu1 %vm40_vm0, %v3353_v7 }
  0x2b   :  { %2894 = vmatprep.mubr.msk.f32.mxu0 %vm40_vm0, %v3358_v8  ;;  %2908 = vmatprep.mubr.msk.f32.mxu1 %vm40_vm0, %v3358_v8 }
  0x2e   :  { %2895 = vmatmul.mubr.msk.f32.gmra.mrb[12].mxu0 %vm40_vm0, %v3381_v11  ;;  %2909 = vmatmul.mubr.msk.f32.gmra.mrb[12].mxu1 %vm40_vm0, %v3381_v11 }
  0x2f   :  { %2897 = vmatprep.mubr.msk.f32.mxu0 %vm40_vm0, %v3386_v12  ;;  %2911 = vmatprep.mubr.msk.f32.mxu1 %vm40_vm0, %v3386_v12 }
  0x32   :  { %2898 = vmatmul.mubr.msk.f32.gmra.mrb[14].mxu0 %vm40_vm0, %v3399_v13  ;;  %2912 = vmatmul.mubr.msk.f32.gmra.mrb[14].mxu1 %vm40_vm0, %v3399_v13 }
  0x33   :  { %2916 = vmatprep.mubr.msk.f32.mxu0 %vm40_vm0, %v3324_v2  ;;  %2930 = vmatprep.mubr.msk.f32.mxu1 %vm40_vm0, %v3324_v2 }
  0x36   :  { %2917 = vmatmul.mubr.msk.f32.vlgmr.msra.gmra.mrb[16].mxu0 %vm40_vm0, %v3329_v3  ;;  %2931 = vmatmul.mubr.msk.f32.vlgmr.msra.gmra.mrb[16].mxu1 %vm40_vm0, %v3329_v3 }
  0x37   :  { %2943 = vmatpush3.msra.mxu0 %v2750_v14  ;;  %2919 = vmatprep.mubr.msk.f32.mxu0 %vm40_vm0, %v3348_v6 }
  0x38   :  { %2933 = vmatprep.mubr.msk.f32.mxu1 %vm40_vm0, %v3348_v6  ;;  %2957 = vmatpush3.msra.mxu1 %v2759_v15 }
  0x39   :  { %2970 = vmatprep.subr.mxu0 %v2768_v16  ;;  %2984 = vmatprep.subr.bf16.mxu1 %v3276_v17 }
  0x3a   :  { %2920 = vmatmul.mubr.msk.f32.gmra.mrb[18].mxu0 %vm40_vm0, %v3353_v7  ;;  %2934 = vmatmul.mubr.msk.f32.gmra.mrb[18].mxu1 %vm40_vm0, %v3353_v7 }
  0x3b   :  { %2922 = vmatprep.mubr.msk.f32.mxu0 %vm40_vm0, %v3358_v8  ;;  %2936 = vmatprep.mubr.msk.f32.mxu1 %vm40_vm0, %v3358_v8 }
  0x3e   :  { %2923 = vmatmul.mubr.msk.f32.gmra.mrb[20].mxu0 %vm40_vm0, %v3381_v11  ;;  %2937 = vmatmul.mubr.msk.f32.gmra.mrb[20].mxu1 %vm40_vm0, %v3381_v11 }
  0x3f   :  { %2925 = vmatprep.mubr.msk.f32.mxu0 %vm40_vm0, %v3386_v12  ;;  %2939 = vmatprep.mubr.msk.f32.mxu1 %vm40_vm0, %v3386_v12 }
  0x42   :  { %2926 = vmatmul.mubr.msk.f32.gmra.mrb[22].mxu0 %vm40_vm0, %v3399_v13  ;;  %2940 = vmatmul.mubr.msk.f32.gmra.mrb[22].mxu1 %vm40_vm0, %v3399_v13 }
  0x43   :  { %2944 = vmatprep.mubr.msk.f32.mxu0 %vm40_vm0, %v3324_v2  ;;  %2958 = vmatprep.mubr.msk.f32.mxu1 %vm40_vm0, %v3324_v2 }
  0x46   :  { %2945 = vmatmul.mubr.msk.f32.vlgmr.msra.gmra.mrb[24].mxu0 %vm40_vm0, %v3329_v3  ;;  %2959 = vmatmul.mubr.msk.f32.vlgmr.msra.gmra.mrb[24].mxu1 %vm40_vm0, %v3329_v3 }
  0x47   :  { %2947 = vmatprep.mubr.msk.f32.mxu0 %vm40_vm0, %v3348_v6  ;;  %2961 = vmatprep.mubr.msk.f32.mxu1 %vm40_vm0, %v3348_v6 }
  0x48   :  { %2971 = vmatpush3.msra.mxu0 %v2768_v16 }
  0x49   :  { %3032 = vmatprep.subr.bf16.mxu0 %v3276_v17 }
  0x4a   :  { %2948 = vmatmul.mubr.msk.f32.gmra.mrb[26].mxu0 %vm40_vm0, %v3353_v7  ;;  %2962 = vmatmul.mubr.msk.f32.gmra.mrb[26].mxu1 %vm40_vm0, %v3353_v7 }
  0x4b   :  { %2950 = vmatprep.mubr.msk.f32.mxu0 %vm40_vm0, %v3358_v8  ;;  %2964 = vmatprep.mubr.msk.f32.mxu1 %vm40_vm0, %v3358_v8 }
  0x4e   :  { %2951 = vmatmul.mubr.msk.f32.gmra.mrb[28].mxu0 %vm40_vm0, %v3381_v11  ;;  %2965 = vmatmul.mubr.msk.f32.gmra.mrb[28].mxu1 %vm40_vm0, %v3381_v11 }
  0x4f   :  { %2953 = vmatprep.mubr.msk.f32.mxu0 %vm40_vm0, %v3386_v12  ;;  %2967 = vmatprep.mubr.msk.f32.mxu1 %vm40_vm0, %v3386_v12 }
  0x52   :  { %2954 = vmatmul.mubr.msk.f32.gmra.mrb[30].mxu0 %vm40_vm0, %v3399_v13  ;;  %2968 = vmatmul.mubr.msk.f32.gmra.mrb[30].mxu1 %vm40_vm0, %v3399_v13 }
  0x53   :  { %2972 = vmatprep.mubr.msk.f32.mxu0 %vm40_vm0, %v3324_v2  ;;  %1922 = vmatprep.mubr.f32.mxu1 %v1155_v18 }
  0x56   :  { %2973 = vmatmul.mubr.msk.f32.vlgmr.msra.gmra.mrb[32].mxu0 %vm40_vm0, %v3329_v3 }
  0x57   :  { %2975 = vmatprep.mubr.msk.f32.mxu0 %vm40_vm0, %v3348_v6 }
  0x5a   :  { %2976 = vmatmul.mubr.msk.f32.gmra.mrb[34].mxu0 %vm40_vm0, %v3353_v7 }
  0x5b   :  { %2978 = vmatprep.mubr.msk.f32.mxu0 %vm40_vm0, %v3358_v8 }
  0x5e   :  { %2979 = vmatmul.mubr.msk.f32.gmra.mrb[36].mxu0 %vm40_vm0, %v3381_v11 }
  0x5f   :  { %2981 = vmatprep.mubr.msk.f32.mxu0 %vm40_vm0, %v3386_v12 }
  0x62   :  { %2982 = vmatmul.mubr.msk.f32.gmra.mrb[38].mxu0 %vm40_vm0, %v3399_v13 }
  0x63   :  { %2307 = vmatprep.mubr.f32.mxu0 %v1157_v19 }
  0xe9   :  { %v2862_v20 = vpop.f32.mrb[0].mxu0  ;;  %v2876_v21 = vpop.f32.mrb[0].mxu1 }
  0xea   :  { %v1027_v22 = vmax.f32 %v2862_v20, %v2876_v21  ;;  %v131_v23 = vpop.f32.mrb[1].mxu0  ;;  %v238_v24 = vpop.f32.mrb[1].mxu1 }
  0xeb   :  { %v1026_v25 = vmax.f32 %v131_v23, %v238_v24 }
  0xec   :  { %1035 = vst.msk [vmem:[#allocation2 + $0x8] sm:$0xff] %vm40_vm0, %v1027_v22 }
  0xed   :  { %1034 = vst.msk [vmem:[#allocation2] sm:$0xff] %vm40_vm0, %v1026_v25  ;;  %v2865_v26 = vpop.f32.mrb[2].mxu0  ;;  %v2879_v27 = vpop.f32.mrb[2].mxu1 }
  0xee   :  { %v1029_v28 = vmax.f32 %v2865_v26, %v2879_v27  ;;  %v141_v29 = vpop.f32.mrb[3].mxu0  ;;  %v248_v30 = vpop.f32.mrb[3].mxu1 }
  0xef   :  { %v1028_v31 = vmax.f32 %v141_v29, %v248_v30 }
  0xf0   :  { %1037 = vst.msk [vmem:[#allocation2 + $0x18] sm:$0xff] %vm40_vm0, %v1029_v28 }
  0xf1   :  { %1036 = vst.msk [vmem:[#allocation2 + $0x10] sm:$0xff] %vm40_vm0, %v1028_v31  ;;  %v2868_v32 = vpop.f32.mrb[4].mxu0  ;;  %v3532_v33 = vpop.f32.mrb[4].mxu1 }
  0xf2   :  { %v1031_v34 = vmax.f32 %v2868_v32, %v3532_v33  ;;  %v151_v35 = vpop.f32.mrb[5].mxu0  ;;  %v3535_v36 = vpop.f32.mrb[5].mxu1 }
  0xf3   :  { %v1030_v37 = vmax.f32 %v151_v35, %v3535_v36  ;;  %v1411_v38 = vld [vmem:[#allocation2 + $0x8] sm:$0xff] }
  0xf4   :  { %1039 = vst.msk [vmem:[#allocation2 + $0x28] sm:$0xff] %vm40_vm0, %v1031_v34  ;;  %v1410_v39 = vld [vmem:[#allocation2] sm:$0xff] }
  0xf5   :  { %1038 = vst.msk [vmem:[#allocation2 + $0x20] sm:$0xff] %vm40_vm0, %v1030_v37  ;;  %v2871_v40 = vpop.f32.mrb[6].mxu0  ;;  %v3540_v41 = vpop.f32.mrb[6].mxu1  ;;  %v2985_v42 = vpack.c.bf16 %v1411_v38, %v1410_v39 }
  0xf6   :  { %v1033_v43 = vmax.f32 %v2871_v40, %v3540_v41  ;;  %v161_v44 = vpop.f32.mrb[7].mxu0  ;;  %v3543_v45 = vpop.f32.mrb[7].mxu1 }
  0xf7   :  { %v1032_v46 = vmax.f32 %v161_v44, %v3543_v45  ;;  %2986 = vmatpush1.bf16.msra.mxu1 %v2985_v42  ;;  %v1413_v47 = vld [vmem:[#allocation2 + $0x18] sm:$0xff] }
  0xf8   :  { %1041 = vst.msk [vmem:[#allocation2 + $0x38] sm:$0xff] %vm40_vm0, %v1033_v43  ;;  %2987 = vmatprep.subr.bf16.mxu1 %v3276_v17  ;;  %v1412_v48 = vld [vmem:[#allocation2 + $0x10] sm:$0xff] }
  0xf9   :  { %1040 = vst.msk [vmem:[#allocation2 + $0x30] sm:$0xff] %vm40_vm0, %v1032_v46  ;;  %v2890_v49 = vpop.f32.mrb[8].mxu0  ;;  %v3549_v50 = vpop.f32.mrb[8].mxu1  ;;  %v2988_v51 = vpack.c.bf16 %v1413_v47, %v1412_v48 }
  0xfa   :  { %v1043_v52 = vmax.f32 %v2876_v21, %v2890_v49  ;;  %v1059_v53 = vmax.f32 %v2890_v49, %v3549_v50  ;;  %v345_v54 = vpop.f32.mrb[9].mxu0  ;;  %v3552_v55 = vpop.f32.mrb[9].mxu1 }
  0xfb   :  { %v1042_v56 = vmax.f32 %v238_v24, %v345_v54  ;;  %v1058_v57 = vmax.f32 %v345_v54, %v3552_v55  ;;  %2989 = vmatpush1.bf16.msra.mxu1 %v2988_v51  ;;  %v1415_v58 = vld [vmem:[#allocation2 + $0x28] sm:$0xff] }
  0xfc   :  { %1051 = vst.msk [vmem:[#allocation2 + $0x48] sm:$0xff] %vm40_vm0, %v1043_v52  ;;  %1067 = vst.msk [vmem:[#allocation2 + $0x88] sm:$0xff] %vm40_vm0, %v1059_v53  ;;  %2990 = vmatprep.subr.bf16.mxu1 %v3276_v17  ;;  %v1414_v59 = vld [vmem:[#allocation2 + $0x20] sm:$0xff] }
  0xfd   :  { %1050 = vst.msk [vmem:[#allocation2 + $0x40] sm:$0xff] %vm40_vm0, %v1042_v56  ;;  %1066 = vst.msk [vmem:[#allocation2 + $0x80] sm:$0xff] %vm40_vm0, %v1058_v57  ;;  %v2893_v60 = vpop.f32.mrb[10].mxu0  ;;  %v3560_v61 = vpop.f32.mrb[10].mxu1  ;;  %v2991_v62 = vpack.c.bf16 %v1415_v58, %v1414_v59 }
  0xfe   :  { %v1045_v63 = vmax.f32 %v2879_v27, %v2893_v60  ;;  %v1061_v0 = vmax.f32 %v2893_v60, %v3560_v61  ;;  %v355_v1 = vpop.f32.mrb[11].mxu0  ;;  %v3563_v2 = vpop.f32.mrb[11].mxu1 }
  0xff   :  { %v1044_v3 = vmax.f32 %v248_v30, %v355_v1  ;;  %v1060_v4 = vmax.f32 %v355_v1, %v3563_v2  ;;  %2992 = vmatpush1.bf16.msra.mxu1 %v2991_v62  ;;  %v1417_v5 = vld [vmem:[#allocation2 + $0x38] sm:$0xff] }
 0x100   :  { %1053 = vst.msk [vmem:[#allocation2 + $0x58] sm:$0xff] %vm40_vm0, %v1045_v63  ;;  %1069 = vst.msk [vmem:[#allocation2 + $0x98] sm:$0xff] %vm40_vm0, %v1061_v0  ;;  %2993 = vmatprep.subr.bf16.mxu1 %v3276_v17  ;;  %v1416_v6 = vld [vmem:[#allocation2 + $0x30] sm:$0xff] }
 0x101   :  { %1052 = vst.msk [vmem:[#allocation2 + $0x50] sm:$0xff] %vm40_vm0, %v1044_v3  ;;  %1068 = vst.msk [vmem:[#allocation2 + $0x90] sm:$0xff] %vm40_vm0, %v1060_v4  ;;  %v2896_v7 = vpop.f32.mrb[12].mxu0  ;;  %v3571_v8 = vpop.f32.mrb[12].mxu1  ;;  %v2994_v9 = vpack.c.bf16 %v1417_v5, %v1416_v6 }
 0x102   :  { %v1047_v10 = vmax.f32 %v3532_v33, %v2896_v7  ;;  %v1063_v11 = vmax.f32 %v2896_v7, %v3571_v8  ;;  %v365_v12 = vpop.f32.mrb[13].mxu0  ;;  %v3575_v13 = vpop.f32.mrb[13].mxu1 }
 0x103   :  { %v1046_v14 = vmax.f32 %v3535_v36, %v365_v12  ;;  %v1062_v15 = vmax.f32 %v365_v12, %v3575_v13  ;;  %2995 = vmatpush1.bf16.msra.mxu1 %v2994_v9  ;;  %v1419_v16 = vld [vmem:[#allocation2 + $0x48] sm:$0xff] }
 0x104   :  { %1055 = vst.msk [vmem:[#allocation2 + $0x68] sm:$0xff] %vm40_vm0, %v1047_v10  ;;  %1071 = vst.msk [vmem:[#allocation2 + $0xa8] sm:$0xff] %vm40_vm0, %v1063_v11  ;;  %2996 = vmatprep.subr.bf16.mxu1 %v3276_v17  ;;  %v1418_v18 = vld [vmem:[#allocation2 + $0x40] sm:$0xff]  ;;  %v1427_v60 = vld [vmem:[#allocation2 + $0x88] sm:$0xff] }
 0x105   :  { %1054 = vst.msk [vmem:[#allocation2 + $0x60] sm:$0xff] %vm40_vm0, %v1046_v14  ;;  %1070 = vst.msk [vmem:[#allocation2 + $0xa0] sm:$0xff] %vm40_vm0, %v1062_v15  ;;  %v2899_v19 = vpop.f32.mrb[14].mxu0  ;;  %v3584_v20 = vpop.f32.mrb[14].mxu1  ;;  %v2997_v21 = vpack.c.bf16 %v1419_v16, %v1418_v18  ;;  %v1426_v59 = vld [vmem:[#allocation2 + $0x80] sm:$0xff] }
 0x106   :  { %v1049_v22 = vmax.f32 %v3540_v41, %v2899_v19  ;;  %v1065_v23 = vmax.f32 %v2899_v19, %v3584_v20  ;;  %v375_v24 = vpop.f32.mrb[15].mxu0  ;;  %v3588_v25 = vpop.f32.mrb[15].mxu1  ;;  %v3009_v3 = vpack.c.bf16 %v1427_v60, %v1426_v59 }
 0x107   :  { %v1048_v26 = vmax.f32 %v3543_v45, %v375_v24  ;;  %v1064_v27 = vmax.f32 %v375_v24, %v3588_v25  ;;  %2998 = vmatpush1.bf16.msra.mxu1 %v2997_v21  ;;  %v1421_v28 = vld [vmem:[#allocation2 + $0x58] sm:$0xff]  ;;  %v1474_v21 = vld [vmem:[%s4328_s3] sm:$0xff] }
 0x108   :  { %1057 = vst.msk [vmem:[#allocation2 + $0x78] sm:$0xff] %vm40_vm0, %v1049_v22  ;;  %1073 = vst.msk [vmem:[#allocation2 + $0xb8] sm:$0xff] %vm40_vm0, %v1065_v23  ;;  %2999 = vmatprep.subr.bf16.mxu1 %v3276_v17  ;;  %v1420_v29 = vld [vmem:[#allocation2 + $0x50] sm:$0xff]  ;;  %v1429_v10 = vld [vmem:[#allocation2 + $0x98] sm:$0xff] }
 0x109   :  { %1056 = vst.msk [vmem:[#allocation2 + $0x70] sm:$0xff] %vm40_vm0, %v1048_v26  ;;  %1072 = vst.msk [vmem:[#allocation2 + $0xb0] sm:$0xff] %vm40_vm0, %v1064_v27  ;;  %v2918_v30 = vpop.f32.mrb[16].mxu0  ;;  %v3597_v31 = vpop.f32.mrb[16].mxu1  ;;  %v3000_v32 = vpack.c.bf16 %v1421_v28, %v1420_v29  ;;  %v1428_v9 = vld [vmem:[#allocation2 + $0x90] sm:$0xff] }
 0x10a   :  { %v1075_v33 = vmax.f32 %v3549_v50, %v2918_v30  ;;  %v1091_v34 = vmax.f32 %v2918_v30, %v3597_v31  ;;  %v559_v35 = vpop.f32.mrb[17].mxu0  ;;  %v3601_v36 = vpop.f32.mrb[17].mxu1  ;;  %v3012_v18 = vpack.c.bf16 %v1429_v10, %v1428_v9 }
 0x10b   :  { %v1074_v37 = vmax.f32 %v3552_v55, %v559_v35  ;;  %v1090_v38 = vmax.f32 %v559_v35, %v3601_v36  ;;  %3001 = vmatpush1.bf16.msra.mxu1 %v3000_v32  ;;  %v1423_v39 = vld [vmem:[#allocation2 + $0x68] sm:$0xff] }
 0x10c   :  { %1083 = vst.msk [vmem:[#allocation2 + $0xc8] sm:$0xff] %vm40_vm0, %v1075_v33  ;;  %1099 = vst.msk [vmem:[#allocation2 + $0x108] sm:$0xff] %vm40_vm0, %v1091_v34  ;;  %3002 = vmatprep.subr.bf16.mxu1 %v3276_v17  ;;  %v1422_v40 = vld [vmem:[#allocation2 + $0x60] sm:$0xff]  ;;  %v1431_v27 = vld [vmem:[#allocation2 + $0xa8] sm:$0xff] }
 0x10d   :  { %1082 = vst.msk [vmem:[#allocation2 + $0xc0] sm:$0xff] %vm40_vm0, %v1074_v37  ;;  %1098 = vst.msk [vmem:[#allocation2 + $0x100] sm:$0xff] %vm40_vm0, %v1090_v38  ;;  %v2921_v41 = vpop.f32.mrb[18].mxu0  ;;  %v3610_v42 = vpop.f32.mrb[18].mxu1  ;;  %v3003_v43 = vpack.c.bf16 %v1423_v39, %v1422_v40  ;;  %v1430_v26 = vld [vmem:[#allocation2 + $0xa0] sm:$0xff] }
 0x10e   :  { %v1077_v44 = vmax.f32 %v3560_v61, %v2921_v41  ;;  %v1093_v45 = vmax.f32 %v2921_v41, %v3610_v42  ;;  %v569_v46 = vpop.f32.mrb[19].mxu0  ;;  %v3614_v47 = vpop.f32.mrb[19].mxu1  ;;  %v3015_v34 = vpack.c.bf16 %v1431_v27, %v1430_v26 }
 0x10f   :  { %v1076_v48 = vmax.f32 %v3563_v2, %v569_v46  ;;  %v1092_v49 = vmax.f32 %v569_v46, %v3614_v47  ;;  %3004 = vmatpush1.bf16.msra.mxu1 %v3003_v43  ;;  %v1425_v50 = vld [vmem:[#allocation2 + $0x78] sm:$0xff] }
 0x110   :  { %1085 = vst.msk [vmem:[#allocation2 + $0xd8] sm:$0xff] %vm40_vm0, %v1077_v44  ;;  %1101 = vst.msk [vmem:[#allocation2 + $0x118] sm:$0xff] %vm40_vm0, %v1093_v45  ;;  %3005 = vmatprep.subr.bf16.mxu1 %v3276_v17  ;;  %v1424_v51 = vld [vmem:[#allocation2 + $0x70] sm:$0xff]  ;;  %v1433_v43 = vld [vmem:[#allocation2 + $0xb8] sm:$0xff] }
 0x111   :  { %1084 = vst.msk [vmem:[#allocation2 + $0xd0] sm:$0xff] %vm40_vm0, %v1076_v48  ;;  %1100 = vst.msk [vmem:[#allocation2 + $0x110] sm:$0xff] %vm40_vm0, %v1092_v49  ;;  %v2924_v52 = vpop.f32.mrb[20].mxu0  ;;  %v3623_v53 = vpop.f32.mrb[20].mxu1  ;;  %v3006_v54 = vpack.c.bf16 %v1425_v50, %v1424_v51  ;;  %v1432_v41 = vld [vmem:[#allocation2 + $0xb0] sm:$0xff] }
 0x112   :  { %v1079_v55 = vmax.f32 %v3571_v8, %v2924_v52  ;;  %v1095_v56 = vmax.f32 %v2924_v52, %v3623_v53  ;;  %v579_v57 = vpop.f32.mrb[21].mxu0  ;;  %v3627_v58 = vpop.f32.mrb[21].mxu1  ;;  %v3018_v49 = vpack.c.bf16 %v1433_v43, %v1432_v41  ;;  %v1476_v51 = vld [vmem:[%s4328_s3 + $0x10] sm:$0xff] }
 0x113   :  { %v1078_v61 = vmax.f32 %v3575_v13, %v579_v57  ;;  %v1094_v62 = vmax.f32 %v579_v57, %v3627_v58  ;;  %3007 = vmatpush1.bf16.msra.mxu1 %v3006_v54  ;;  %v1443_v63 = vld [vmem:[#allocation2 + $0x108] sm:$0xff] }
 0x114   :  { %1087 = vst.msk [vmem:[#allocation2 + $0xe8] sm:$0xff] %vm40_vm0, %v1079_v55  ;;  %1103 = vst.msk [vmem:[#allocation2 + $0x128] sm:$0xff] %vm40_vm0, %v1095_v56  ;;  %3008 = vmatprep.subr.bf16.mxu1 %v3276_v17  ;;  %v1442_v0 = vld [vmem:[#allocation2 + $0x100] sm:$0xff]  ;;  %v1435_v59 = vld [vmem:[#allocation2 + $0xc8] sm:$0xff] }
 0x115   :  { %1086 = vst.msk [vmem:[#allocation2 + $0xe0] sm:$0xff] %vm40_vm0, %v1078_v61  ;;  %1102 = vst.msk [vmem:[#allocation2 + $0x120] sm:$0xff] %vm40_vm0, %v1094_v62  ;;  %v2927_v1 = vpop.f32.mrb[22].mxu0  ;;  %v3636_v2 = vpop.f32.mrb[22].mxu1  ;;  %v3638_v4 = vpack.c.bf16 %v1443_v63, %v1442_v0  ;;  %v1434_v57 = vld [vmem:[#allocation2 + $0xc0] sm:$0xff] }
 0x116   :  { %v1081_v5 = vmax.f32 %v3584_v20, %v2927_v1  ;;  %v1097_v6 = vmax.f32 %v2927_v1, %v3636_v2  ;;  %v589_v7 = vpop.f32.mrb[23].mxu0  ;;  %v3642_v8 = vpop.f32.mrb[23].mxu1  ;;  %v3277_v20 = vmov 0   ;;  %v3021_v0 = vpack.c.bf16 %v1435_v59, %v1434_v57 }
 0x117   :  { %v1080_v11 = vmax.f32 %v3588_v25, %v589_v7  ;;  %v1096_v12 = vmax.f32 %v589_v7, %v3642_v8  ;;  %3010 = vmatpush1.bf16.msra.mxu1 %v3009_v3  ;;  %3034 = vmatpush1.bf16.msra.mxu0 %v3638_v4  ;;  %v1445_v13 = vld [vmem:[#allocation2 + $0x118] sm:$0xff] }
 0x118   :  { %1089 = vst.msk [vmem:[#allocation2 + $0xf8] sm:$0xff] %vm40_vm0, %v1081_v5  ;;  %1105 = vst.msk [vmem:[#allocation2 + $0x138] sm:$0xff] %vm40_vm0, %v1097_v6  ;;  %3011 = vmatprep.subr.bf16.mxu1 %v3276_v17  ;;  %3035 = vmatprep.subr.bf16.mxu0 %v3276_v17  ;;  %v1444_v14 = vld [vmem:[#allocation2 + $0x110] sm:$0xff]  ;;  %v1477_v3 = vld [vmem:[%s4328_s3 + $0x18] sm:$0xff] }
 0x119   :  { %1088 = vst.msk [vmem:[#allocation2 + $0xf0] sm:$0xff] %vm40_vm0, %v1080_v11  ;;  %1104 = vst.msk [vmem:[#allocation2 + $0x130] sm:$0xff] %vm40_vm0, %v1096_v12  ;;  %v2946_v15 = vpop.f32.mrb[24].mxu0  ;;  %v3653_v16 = vpop.f32.mrb[24].mxu1  ;;  %v3655_v19 = vpack.c.bf16 %v1445_v13, %v1444_v14  ;;  %3247 = vset.pattern.permute.xlu0 %v3277_v20  ;;  %3248 = vset.pattern.permute.xlu1 %v3277_v20  ;;  %v1436_v10 = vld [vmem:[#allocation2 + $0xd0] sm:$0xff]  ;;  %v1437_v11 = vld [vmem:[#allocation2 + $0xd8] sm:$0xff] }
 0x11a   :  { %v1107_v22 = vmax.f32 %v3597_v31, %v2946_v15  ;;  %v1123_v23 = vmax.f32 %v2946_v15, %v3653_v16  ;;  %v773_v24 = vpop.f32.mrb[25].mxu0  ;;  %v3662_v25 = vpop.f32.mrb[25].mxu1  ;;  %1540 = vperm.xlu0 %3247, %v1474_v21   ;;  %1550 = vperm.xlu1 %3248, %v1476_v51   ;;  %v3024_v15 = vpack.c.bf16 %v1437_v11, %v1436_v10  ;;  %v1478_v20 = vld [vmem:[%s4328_s3 + $0x20] sm:$0xff]  ;;  %v1487_v10 = vld [vmem:[%s4328_s3 + $0x68] sm:$0xff] }
 0x11b   :  { %v1106_v28 = vmax.f32 %v3601_v36, %v773_v24  ;;  %v1122_v29 = vmax.f32 %v773_v24, %v3662_v25  ;;  %3013 = vmatpush1.bf16.msra.mxu1 %v3012_v18  ;;  %3037 = vmatpush1.bf16.msra.mxu0 %v3655_v19  ;;  %v1447_v30 = vld [vmem:[#allocation2 + $0x128] sm:$0xff]  ;;  %v1154_v51 = vld [vmem:[#allocation3] sm:$0xff] }
 0x11c   :  { %1115 = vst.msk [vmem:[#allocation2 + $0x148] sm:$0xff] %vm40_vm0, %v1107_v22  ;;  %1131 = vst.msk [vmem:[#allocation2 + $0x188] sm:$0xff] %vm40_vm0, %v1123_v23  ;;  %3014 = vmatprep.subr.bf16.mxu1 %v3276_v17  ;;  %3038 = vmatprep.subr.bf16.mxu0 %v3276_v17  ;;  %v1446_v31 = vld [vmem:[#allocation2 + $0x120] sm:$0xff]  ;;  %v1475_v36 = vld [vmem:[%s4328_s3 + $0x8] sm:$0xff] }
 0x11d   :  { %1114 = vst.msk [vmem:[#allocation2 + $0x140] sm:$0xff] %vm40_vm0, %v1106_v28  ;;  %1130 = vst.msk [vmem:[#allocation2 + $0x180] sm:$0xff] %vm40_vm0, %v1122_v29  ;;  %v2949_v32 = vpop.f32.mrb[26].mxu0  ;;  %v3673_v33 = vpop.f32.mrb[26].mxu1  ;;  %v3675_v35 = vpack.c.bf16 %v1447_v30, %v1446_v31  ;;  %v1438_v23 = vld [vmem:[#allocation2 + $0xe0] sm:$0xff]  ;;  %v1439_v24 = vld [vmem:[#allocation2 + $0xe8] sm:$0xff] }
 0x11e   :  { %v1109_v37 = vmax.f32 %v3610_v42, %v2949_v32  ;;  %v1125_v38 = vmax.f32 %v2949_v32, %v3673_v33  ;;  %v783_v39 = vpop.f32.mrb[27].mxu0  ;;  %v3682_v40 = vpop.f32.mrb[27].mxu1  ;;  %1545 = vperm.xlu0 %3247, %v1475_v36   ;;  %1555 = vperm.xlu1 %3248, %v1477_v3   ;;  %v3027_v29 = vpack.c.bf16 %v1439_v24, %v1438_v23  ;;  %v1175_v23 = vld [vmem:[#allocation3 + $0xa8] sm:$0xff] }
 0x11f   :  { %v1108_v44 = vmax.f32 %v3614_v47, %v783_v39  ;;  %v1124_v45 = vmax.f32 %v783_v39, %v3682_v40  ;;  %3016 = vmatpush1.bf16.msra.mxu1 %v3015_v34  ;;  %3040 = vmatpush1.bf16.msra.mxu0 %v3675_v35  ;;  %v1449_v46 = vld [vmem:[#allocation2 + $0x138] sm:$0xff]  ;;  %v1491_v24 = vld [vmem:[%s4328_s3 + $0x88] sm:$0xff] }
 0x120   :  { %1117 = vst.msk [vmem:[#allocation2 + $0x158] sm:$0xff] %vm40_vm0, %v1109_v37  ;;  %1133 = vst.msk [vmem:[#allocation2 + $0x198] sm:$0xff] %vm40_vm0, %v1125_v38  ;;  %3017 = vmatprep.subr.bf16.mxu1 %v3276_v17  ;;  %3041 = vmatprep.subr.bf16.mxu0 %v3276_v17  ;;  %v1448_v42 = vld [vmem:[#allocation2 + $0x130] sm:$0xff]  ;;  %v1441_v36 = vld [vmem:[#allocation2 + $0xf8] sm:$0xff] }
 0x121   :  { %1116 = vst.msk [vmem:[#allocation2 + $0x150] sm:$0xff] %vm40_vm0, %v1108_v44  ;;  %1132 = vst.msk [vmem:[#allocation2 + $0x190] sm:$0xff] %vm40_vm0, %v1124_v45  ;;  %v2952_v47 = vpop.f32.mrb[28].mxu0  ;;  %v3693_v48 = vpop.f32.mrb[28].mxu1  ;;  %v3695_v50 = vpack.c.bf16 %v1449_v46, %v1448_v42  ;;  %v1440_v34 = vld [vmem:[#allocation2 + $0xf0] sm:$0xff] }
 0x122   :  { %v1111_v52 = vmax.f32 %v3623_v53, %v2952_v47  ;;  %v1127_v54 = vmax.f32 %v2952_v47, %v3693_v48  ;;  %v793_v55 = vpop.f32.mrb[29].mxu0  ;;  %v3702_v56 = vpop.f32.mrb[29].mxu1  ;;  %1560 = vperm.xlu0 %3247, %v1478_v20   ;;  %v3030_v41 = vpack.c.bf16 %v1441_v36, %v1440_v34  ;;  %v1480_v44 = vld [vmem:[%s4328_s3 + $0x30] sm:$0xff]  ;;  %v1178_v34 = vld [vmem:[#allocation3 + $0xc0] sm:$0xff] }
 0x123   :  { %v1110_v60 = vmax.f32 %v3627_v58, %v793_v55  ;;  %v1126_v61 = vmax.f32 %v793_v55, %v3702_v56  ;;  %3019 = vmatpush1.bf16.msra.mxu1 %v3018_v49  ;;  %3043 = vmatpush1.bf16.msra.mxu0 %v3695_v50  ;;  %v1451_v62 = vld [vmem:[#allocation2 + $0x148] sm:$0xff] }
 0x124   :  { %1119 = vst.msk [vmem:[#allocation2 + $0x168] sm:$0xff] %vm40_vm0, %v1111_v52  ;;  %1135 = vst.msk [vmem:[#allocation2 + $0x1a8] sm:$0xff] %vm40_vm0, %v1127_v54  ;;  %3020 = vmatprep.subr.bf16.mxu1 %v3276_v17  ;;  %3044 = vmatprep.subr.bf16.mxu0 %v3276_v17  ;;  %v1450_v53 = vld [vmem:[#allocation2 + $0x140] sm:$0xff]  ;;  %v1459_v47 = vld [vmem:[#allocation2 + $0x188] sm:$0xff] }
 0x125   :  { %1118 = vst.msk [vmem:[#allocation2 + $0x160] sm:$0xff] %vm40_vm0, %v1110_v60  ;;  %1134 = vst.msk [vmem:[#allocation2 + $0x1a0] sm:$0xff] %vm40_vm0, %v1126_v61  ;;  %v2955_v58 = vpop.f32.mrb[30].mxu0  ;;  %v3713_v63 = vpop.f32.mrb[30].mxu1  ;;  %v3715_v1 = vpack.c.bf16 %v1451_v62, %v1450_v53  ;;  %v1458_v42 = vld [vmem:[#allocation2 + $0x180] sm:$0xff]  ;;  %v1159_v54 = vld [vmem:[#allocation3 + $0x28] sm:$0xff] }
 0x126   :  { %v1113_v5 = vmax.f32 %v3636_v2, %v2955_v58  ;;  %v1129_v6 = vmax.f32 %v2955_v58, %v3713_v63  ;;  %v803_v7 = vpop.f32.mrb[31].mxu0  ;;  %v3722_v9 = vpop.f32.mrb[31].mxu1  ;;  %1570 = vperm.xlu0 %3247, %v1480_v44   ;;  %v3772_v52 = vpack.c.bf16 %v1459_v47, %v1458_v42  ;;  %v1483_v55 = vld [vmem:[%s4328_s3 + $0x48] sm:$0xff]  ;;  %v1482_v61 = vld [vmem:[%s4328_s3 + $0x40] sm:$0xff]  ;;  %v1156_v42 = vld [vmem:[#allocation3 + $0x10] sm:$0xff] }
 0x127   :  { %v1112_v12 = vmax.f32 %v3642_v8, %v803_v7  ;;  %v1128_v13 = vmax.f32 %v803_v7, %v3722_v9  ;;  %3022 = vmatpush1.bf16.msra.mxu1 %v3021_v0  ;;  %3046 = vmatpush1.bf16.msra.mxu0 %v3715_v1  ;;  %v1453_v14 = vld [vmem:[#allocation2 + $0x158] sm:$0xff]  ;;  %v1158_v53 = vld [vmem:[#allocation3 + $0x20] sm:$0xff]  ;;  %v1187_v44 = vld [vmem:[#allocation3 + $0x108] sm:$0xff] }
 0x128   :  { %1121 = vst.msk [vmem:[#allocation2 + $0x178] sm:$0xff] %vm40_vm0, %v1113_v5  ;;  %1137 = vst.msk [vmem:[#allocation2 + $0x1b8] sm:$0xff] %vm40_vm0, %v1129_v6  ;;  %3023 = vmatprep.subr.bf16.mxu1 %v3276_v17  ;;  %3047 = vmatprep.subr.bf16.mxu0 %v3276_v17  ;;  %v1452_v2 = vld [vmem:[#allocation2 + $0x150] sm:$0xff]  ;;  %v1461_v60 = vld [vmem:[#allocation2 + $0x198] sm:$0xff] }
 0x129   :  { %1120 = vst.msk [vmem:[#allocation2 + $0x170] sm:$0xff] %vm40_vm0, %v1112_v12  ;;  %1136 = vst.msk [vmem:[#allocation2 + $0x1b0] sm:$0xff] %vm40_vm0, %v1128_v13  ;;  %v2974_v8 = vpop.f32.mrb[32].mxu0  ;;  %v3733_v18 = vpack.c.bf16 %v1453_v14, %v1452_v2  ;;  %v1460_v59 = vld [vmem:[#allocation2 + $0x190] sm:$0xff]  ;;  %v1162_v6 = vld [vmem:[#allocation3 + $0x40] sm:$0xff] }
 0x12a   :  { %v1139_v21 = vmax.f32 %v3653_v16, %v2974_v8  ;;  %v987_v22 = vpop.f32.mrb[33].mxu0  ;;  %v3788_v58 = vpack.c.bf16 %v1461_v60, %v1460_v59  ;;  %1580 = vperm.xlu0 %3247, %v1482_v61   ;;  %v1484_v5 = vld [vmem:[%s4328_s3 + $0x50] sm:$0xff]  ;;  %v1166_v13 = vld [vmem:[#allocation3 + $0x60] sm:$0xff]  ;;  %v1171_v2 = vld [vmem:[#allocation3 + $0x88] sm:$0xff] }
 0x12b   :  { %v1138_v26 = vmax.f32 %v3662_v25, %v987_v22  ;;  %3025 = vmatpush1.bf16.msra.mxu1 %v3024_v15  ;;  %3049 = vmatpush1.bf16.msra.mxu0 %v3733_v18  ;;  %v1455_v27 = vld [vmem:[#allocation2 + $0x168] sm:$0xff]  ;;  %v1489_v8 = vld [vmem:[%s4328_s3 + $0x78] sm:$0xff]  ;;  %v1194_v59 = vld [vmem:[#allocation3 + $0x140] sm:$0xff] }
 0x12c   :  { %1147 = vst.msk [vmem:[#allocation2 + $0x1c8] sm:$0xff] %vm40_vm0, %v1139_v21  ;;  %3026 = vmatprep.subr.bf16.mxu1 %v3276_v17  ;;  %3050 = vmatprep.subr.bf16.mxu0 %v3276_v17  ;;  %v1454_v28 = vld [vmem:[#allocation2 + $0x160] sm:$0xff]  ;;  %v1479_v25 = vld [vmem:[%s4328_s3 + $0x28] sm:$0xff]  ;;  %v1164_v60 = vld [vmem:[#allocation3 + $0x50] sm:$0xff] }
 0x12d   :  { %1146 = vst.msk [vmem:[#allocation2 + $0x1c0] sm:$0xff] %vm40_vm0, %v1138_v26  ;;  %v2977_v16 = vpop.f32.mrb[34].mxu0  ;;  %v3745_v30 = vpack.c.bf16 %v1455_v27, %v1454_v28  ;;  %1565 = vperm.xlu1 %3248, %v1479_v25   ;;  %v1462_v0 = vld [vmem:[#allocation2 + $0x1a0] sm:$0xff]  ;;  %v1463_v3 = vld [vmem:[#allocation2 + $0x1a8] sm:$0xff]  ;;  %v1493_v25 = vld [vmem:[%s4328_s3 + $0x98] sm:$0xff] }
 0x12e   :  { %v1141_v31 = vmax.f32 %v3673_v33, %v2977_v16  ;;  %v997_v32 = vpop.f32.mrb[35].mxu0  ;;  %v3800_v7 = vpack.c.bf16 %v1463_v3, %v1462_v0  ;;  %1590 = vperm.xlu0 %3247, %v1484_v5   ;;  %v1170_v21 = vld [vmem:[#allocation3 + $0x80] sm:$0xff]  ;;  %v1191_v47 = vld [vmem:[#allocation3 + $0x128] sm:$0xff]  ;;  %v1173_v3 = vld [vmem:[#allocation3 + $0x98] sm:$0xff] }
 0x12f   :  { %v1140_v37 = vmax.f32 %v3682_v40, %v997_v32  ;;  %3028 = vmatpush1.bf16.msra.mxu1 %v3027_v29  ;;  %3052 = vmatpush1.bf16.msra.mxu0 %v3745_v30  ;;  %v1457_v38 = vld [vmem:[#allocation2 + $0x178] sm:$0xff]  ;;  %v1174_v28 = vld [vmem:[#allocation3 + $0xa0] sm:$0xff]  ;;  %v1179_v29 = vld [vmem:[#allocation3 + $0xc8] sm:$0xff] }
 0x130   :  { %1149 = vst.msk [vmem:[#allocation2 + $0x1d8] sm:$0xff] %vm40_vm0, %v1141_v31  ;;  %3029 = vmatprep.subr.bf16.mxu1 %v3276_v17  ;;  %3053 = vmatprep.subr.bf16.mxu0 %v3276_v17  ;;  %v1456_v39 = vld [vmem:[#allocation2 + $0x170] sm:$0xff]  ;;  %v1481_v40 = vld [vmem:[%s4328_s3 + $0x38] sm:$0xff]  ;;  %v1199_v61 = vld [vmem:[#allocation3 + $0x168] sm:$0xff] }
 0x131   :  { %1148 = vst.msk [vmem:[#allocation2 + $0x1d0] sm:$0xff] %vm40_vm0, %v1140_v37  ;;  %v2980_v33 = vpop.f32.mrb[36].mxu0  ;;  %v3757_v43 = vpack.c.bf16 %v1457_v38, %v1456_v39  ;;  %1575 = vperm.xlu1 %3248, %v1481_v40   ;;  %v1464_v11 = vld [vmem:[#allocation2 + $0x1b0] sm:$0xff]  ;;  %v1465_v12 = vld [vmem:[#allocation2 + $0x1b8] sm:$0xff]  ;;  %v1183_v37 = vld [vmem:[#allocation3 + $0xe8] sm:$0xff] }
 0x132   :  { %v1143_v45 = vmax.f32 %v3693_v48, %v2980_v33  ;;  %v1007_v46 = vpop.f32.mrb[37].mxu0  ;;  %v3812_v14 = vpack.c.bf16 %v1465_v12, %v1464_v11  ;;  %v1495_v38 = vld [vmem:[%s4328_s3 + $0xa8] sm:$0xff]  ;;  %v1505_v5 = vld [vmem:[%s4328_s3 + $0xf8] sm:$0xff] }
 0x133   :  { %v1142_v49 = vmax.f32 %v3702_v56, %v1007_v46  ;;  %3031 = vmatpush1.bf16.msra.mxu1 %v3030_v41  ;;  %3055 = vmatpush1.bf16.msra.mxu0 %v3757_v43  ;;  %v1467_v20 = vld [vmem:[#allocation2 + $0x1c8] sm:$0xff]  ;;  %v1182_v41 = vld [vmem:[#allocation3 + $0xe0] sm:$0xff]  ;;  %v1177_v11 = vld [vmem:[#allocation3 + $0xb8] sm:$0xff] }
 0x134   :  { %1151 = vst.msk [vmem:[#allocation2 + $0x1e8] sm:$0xff] %vm40_vm0, %v1143_v45  ;;  %3080 = vmatprep.subr.bf16.mxu1 %v3276_v17  ;;  %3056 = vmatprep.subr.bf16.mxu0 %v3276_v17  ;;  %v1466_v15 = vld [vmem:[#allocation2 + $0x1c0] sm:$0xff]  ;;  %v1497_v45 = vld [vmem:[%s4328_s3 + $0xb8] sm:$0xff]  ;;  %v1203_v0 = vld [vmem:[#allocation3 + $0x188] sm:$0xff] }
 0x135   :  { %1150 = vst.msk [vmem:[#allocation2 + $0x1e0] sm:$0xff] %vm40_vm0, %v1142_v49  ;;  %v2983_v48 = vpop.f32.mrb[38].mxu0  ;;  %1585 = vperm.xlu1 %3248, %v1483_v55   ;;  %v3824_v22 = vpack.c.bf16 %v1467_v20, %v1466_v15  ;;  %v1186_v46 = vld [vmem:[#allocation3 + $0x100] sm:$0xff]  ;;  %v1161_v49 = vld [vmem:[#allocation3 + $0x38] sm:$0xff]  ;;  %v1195_v55 = vld [vmem:[#allocation3 + $0x148] sm:$0xff] }
 0x136   :  { %v1145_v56 = vmax.f32 %v3713_v63, %v2983_v48  ;;  %v1017_v57 = vpop.f32.mrb[39].mxu0  ;;  %1923 = vmatmul.mubr.f32.vlgmr.msra.gmra.mrb[32].mxu1 %v1154_v51  ;;  %v1163_v63 = vld [vmem:[#allocation3 + $0x48] sm:$0xff]  ;;  %v1190_v48 = vld [vmem:[#allocation3 + $0x120] sm:$0xff]  ;;  %v1509_v15 = vld [vmem:[%s4328_s3 + $0x118] sm:$0xff] }
 0x137   :  { %v1144_v62 = vmax.f32 %v3722_v9, %v1017_v57  ;;  %3096 = vmatpush1.bf16.msra.mxu1 %v3638_v4  ;;  %3058 = vmatpush1.bf16.msra.mxu0 %v3772_v52  ;;  %v1485_v4 = vld [vmem:[%s4328_s3 + $0x58] sm:$0xff]  ;;  %v1167_v9 = vld [vmem:[#allocation3 + $0x68] sm:$0xff]  ;;  %v1508_v20 = vld [vmem:[%s4328_s3 + $0x110] sm:$0xff] }
 0x138   :  { %1153 = vst.msk [vmem:[#allocation2 + $0x1f8] sm:$0xff] %vm40_vm0, %v1145_v56  ;;  %1927 = vmatprep.mubr.f32.mxu1 %v1159_v54  ;;  %3081 = vmatprep.subr.bf16.mxu1 %v3276_v17  ;;  %v1468_v26 = vld [vmem:[#allocation2 + $0x1d0] sm:$0xff]  ;;  %v1469_v27 = vld [vmem:[#allocation2 + $0x1d8] sm:$0xff]  ;;  %v1499_v51 = vld [vmem:[%s4328_s3 + $0xc8] sm:$0xff] }
 0x139   :  { %1152 = vst.msk [vmem:[#allocation2 + $0x1f0] sm:$0xff] %vm40_vm0, %v1144_v62  ;;  %3059 = vmatprep.subr.bf16.mxu0 %v3276_v17  ;;  %1595 = vperm.xlu1 %3248, %v1485_v4   ;;  %v3836_v16 = vpack.c.bf16 %v1469_v27, %v1468_v26  ;;  %v1160_v54 = vld [vmem:[#allocation3 + $0x30] sm:$0xff]  ;;  %v1165_v56 = vld [vmem:[#allocation3 + $0x58] sm:$0xff]  ;;  %v1507_v12 = vld [vmem:[%s4328_s3 + $0x108] sm:$0xff] }
 0x13a   :  { %1928 = vmatmul.mubr.f32.gmra.mrb[34].mxu1 %v1158_v53  ;;  %v1501_v57 = vld [vmem:[%s4328_s3 + $0xd8] sm:$0xff]  ;;  %v1503_v53 = vld [vmem:[%s4328_s3 + $0xe8] sm:$0xff]  ;;  %v1168_v4 = vld [vmem:[#allocation3 + $0x70] sm:$0xff] }
 0x13b   :  { %3097 = vmatpush1.bf16.msra.mxu1 %v3655_v19  ;;  %3061 = vmatpush1.bf16.msra.mxu0 %v3788_v58  ;;  %v1486_v19 = vld [vmem:[%s4328_s3 + $0x60] sm:$0xff]  ;;  %v1471_v32 = vld [vmem:[#allocation2 + $0x1e8] sm:$0xff]  ;;  %v1169_v62 = vld [vmem:[#allocation3 + $0x78] sm:$0xff] }
 0x13c   :  { %1932 = vmatprep.mubr.f32.mxu1 %v1163_v63  ;;  %3082 = vmatprep.subr.bf16.mxu1 %v3276_v17  ;;  %v1470_v31 = vld [vmem:[#allocation2 + $0x1e0] sm:$0xff] }
 0x13d   :  { %3062 = vmatprep.subr.bf16.mxu0 %v3276_v17  ;;  %1605 = vperm.xlu1 %3248, %v1487_v10   ;;  %v3848_v36 = vpack.c.bf16 %v1471_v32, %v1470_v31  ;;  %v1198_v63 = vld [vmem:[#allocation3 + $0x160] sm:$0xff]  ;;  %v1207_v10 = vld [vmem:[#allocation3 + $0x1a8] sm:$0xff]  ;;  %v1188_v32 = vld [vmem:[#allocation3 + $0x110] sm:$0xff] }
 0x13e   :  { %1933 = vmatmul.mubr.f32.gmra.mrb[36].mxu1 %v1162_v6  ;;  %1600 = vperm.xlu0 %3247, %v1486_v19   ;;  %v1504_v6 = vld [vmem:[%s4328_s3 + $0xf0] sm:$0xff]  ;;  %v1506_v19 = vld [vmem:[%s4328_s3 + $0x100] sm:$0xff] }
 0x13f   :  { %3098 = vmatpush1.bf16.msra.mxu1 %v3675_v35  ;;  %3064 = vmatpush1.bf16.msra.mxu0 %v3800_v7  ;;  %v1488_v35 = vld [vmem:[%s4328_s3 + $0x70] sm:$0xff]  ;;  %v1473_v33 = vld [vmem:[#allocation2 + $0x1f8] sm:$0xff]  ;;  %v1510_v26 = vld [vmem:[%s4328_s3 + $0x120] sm:$0xff] }
 0x140   :  { %1937 = vmatprep.mubr.f32.mxu1 %v1167_v9  ;;  %3083 = vmatprep.subr.bf16.mxu1 %v3276_v17  ;;  %v1472_v39 = vld [vmem:[#allocation2 + $0x1f0] sm:$0xff]  ;;  %v1214_v27 = vld [vmem:[#allocation3 + $0x1e0] sm:$0xff] }
 0x141   :  { %3065 = vmatprep.subr.bf16.mxu0 %v3276_v17  ;;  %1615 = vperm.xlu1 %3248, %v1489_v8   ;;  %v3860_v40 = vpack.c.bf16 %v1473_v33, %v1472_v39  ;;  %v1172_v9 = vld [vmem:[#allocation3 + $0x90] sm:$0xff]  ;;  %v1181_v8 = vld [vmem:[#allocation3 + $0xd8] sm:$0xff]  ;;  %v1218_v31 = vld [vmem:[#allocation3 + $0x200] sm:$0xff] }
 0x142   :  { %1938 = vmatmul.mubr.f32.gmra.mrb[38].mxu1 %v1166_v13  ;;  %1610 = vperm.xlu0 %3247, %v1488_v35   ;;  %v1206_v13 = vld [vmem:[#allocation3 + $0x1a0] sm:$0xff]  ;;  %v1227_v39 = vld [vmem:[#allocation3 + $0x248] sm:$0xff]  ;;  %v1197_v33 = vld [vmem:[#allocation3 + $0x158] sm:$0xff] }
 0x143   :  { %3099 = vmatpush1.bf16.msra.mxu1 %v3695_v50  ;;  %3067 = vmatpush1.bf16.msra.mxu0 %v3812_v14  ;;  %v1490_v50 = vld [vmem:[%s4328_s3 + $0x80] sm:$0xff] }
 0x144   :  { %1942 = vmatprep.mubr.f32.mxu1 %v1171_v2  ;;  %3084 = vmatprep.subr.bf16.mxu1 %v3276_v17  ;;  %v1211_v2 = vld [vmem:[#allocation3 + $0x1c8] sm:$0xff]  ;;  %v1210_v35 = vld [vmem:[#allocation3 + $0x1c0] sm:$0xff] }
 0x145   :  { %3068 = vmatprep.subr.bf16.mxu0 %v3276_v17  ;;  %1625 = vperm.xlu1 %3248, %v1491_v24   ;;  %v1511_v24 = vld [vmem:[%s4328_s3 + $0x128] sm:$0xff] }
 0x146   :  { %1943 = vmatmul.mubr.f32.gmra.mrb[40].mxu1 %v1170_v21  ;;  %1620 = vperm.xlu0 %3247, %v1490_v50   ;;  %v1180_v21 = vld [vmem:[#allocation3 + $0xd0] sm:$0xff] }
 0x147   :  { %3100 = vmatpush1.bf16.msra.mxu1 %v3715_v1  ;;  %3070 = vmatpush1.bf16.msra.mxu0 %v3824_v22  ;;  %v1492_v1 = vld [vmem:[%s4328_s3 + $0x90] sm:$0xff] }
 0x148   :  { %1947 = vmatprep.mubr.f32.mxu1 %v1175_v23  ;;  %3085 = vmatprep.subr.bf16.mxu1 %v3276_v17  ;;  %v1185_v23 = vld [vmem:[#allocation3 + $0xf8] sm:$0xff]  ;;  %v1184_v50 = vld [vmem:[#allocation3 + $0xf0] sm:$0xff] }
 0x149   :  { %3071 = vmatprep.subr.bf16.mxu0 %v3276_v17  ;;  %1635 = vperm.xlu1 %3248, %v1493_v25   ;;  %v1512_v25 = vld [vmem:[%s4328_s3 + $0x130] sm:$0xff] }
 0x14a   :  { %1948 = vmatmul.mubr.f32.gmra.mrb[42].mxu1 %v1174_v28  ;;  %1630 = vperm.xlu0 %3247, %v1492_v1   ;;  %v1219_v28 = vld [vmem:[#allocation3 + $0x208] sm:$0xff]  ;;  %v1193_v1 = vld [vmem:[#allocation3 + $0x138] sm:$0xff] }
 0x14b   :  { %3101 = vmatpush1.bf16.msra.mxu1 %v3733_v18  ;;  %3073 = vmatpush1.bf16.msra.mxu0 %v3836_v16  ;;  %v1494_v18 = vld [vmem:[%s4328_s3 + $0xa0] sm:$0xff] }
 0x14c   :  { %1952 = vmatprep.mubr.f32.mxu1 %v1179_v29  ;;  %3086 = vmatprep.subr.bf16.mxu1 %v3276_v17  ;;  %v1513_v29 = vld [vmem:[%s4328_s3 + $0x138] sm:$0xff] }
 0x14d   :  { %3074 = vmatprep.subr.bf16.mxu0 %v3276_v17  ;;  %1645 = vperm.xlu1 %3248, %v1495_v38   ;;  %v1192_v38 = vld [vmem:[#allocation3 + $0x130] sm:$0xff] }
 0x14e   :  { %1953 = vmatmul.mubr.f32.gmra.mrb[44].mxu1 %v1178_v34  ;;  %1640 = vperm.xlu0 %3247, %v1494_v18   ;;  %v1515_v34 = vld [vmem:[%s4328_s3 + $0x148] sm:$0xff]  ;;  %v1517_v18 = vld [vmem:[%s4328_s3 + $0x158] sm:$0xff] }
 0x14f   :  { %3102 = vmatpush1.bf16.msra.mxu1 %v3745_v30  ;;  %3076 = vmatpush1.bf16.msra.mxu0 %v3848_v36  ;;  %v1496_v30 = vld [vmem:[%s4328_s3 + $0xb0] sm:$0xff] }
 0x150   :  { %1957 = vmatprep.mubr.f32.mxu1 %v1183_v37  ;;  %3087 = vmatprep.subr.bf16.mxu1 %v3276_v17  ;;  %v1222_v37 = vld [vmem:[#allocation3 + $0x220] sm:$0xff] }
 0x151   :  { %3077 = vmatprep.subr.bf16.mxu0 %v3276_v17  ;;  %1655 = vperm.xlu1 %3248, %v1497_v45   ;;  %v1231_v45 = vld [vmem:[#allocation3 + $0x268] sm:$0xff] }
 0x152   :  { %1958 = vmatmul.mubr.f32.gmra.mrb[46].mxu1 %v1182_v41  ;;  %1650 = vperm.xlu0 %3247, %v1496_v30   ;;  %v1516_v41 = vld [vmem:[%s4328_s3 + $0x150] sm:$0xff]  ;;  %v1201_v30 = vld [vmem:[#allocation3 + $0x178] sm:$0xff] }
 0x153   :  { %3103 = vmatpush1.bf16.msra.mxu1 %v3757_v43  ;;  %3079 = vmatpush1.bf16.msra.mxu0 %v3860_v40  ;;  %v1498_v43 = vld [vmem:[%s4328_s3 + $0xc0] sm:$0xff] }
 0x154   :  { %1962 = vmatprep.mubr.f32.mxu1 %v1187_v44  ;;  %3088 = vmatprep.subr.bf16.mxu1 %v3276_v17  ;;  %v1196_v44 = vld [vmem:[#allocation3 + $0x150] sm:$0xff] }
 0x155   :  { %1665 = vperm.xlu1 %3248, %v1499_v51   ;;  %v1235_v51 = vld [vmem:[#allocation3 + $0x288] sm:$0xff] }
 0x156   :  { %1963 = vmatmul.mubr.f32.gmra.mrb[48].mxu1 %v1186_v46  ;;  %2308 = vmatmul.mubr.f32.vlgmr.msra.gmra.mrb[40].mxu0 %v1156_v42  ;;  %v1519_v46 = vld [vmem:[%s4328_s3 + $0x168] sm:$0xff]  ;;  %v1518_v42 = vld [vmem:[%s4328_s3 + $0x160] sm:$0xff] }
 0x157   :  { %3104 = vmatpush1.bf16.msra.mxu1 %v3772_v52  ;;  %1967 = vmatprep.mubr.f32.mxu1 %v1191_v47  ;;  %v1500_v52 = vld [vmem:[%s4328_s3 + $0xd0] sm:$0xff]  ;;  %v1230_v47 = vld [vmem:[#allocation3 + $0x260] sm:$0xff] }
 0x158   :  { %2312 = vmatprep.mubr.f32.mxu0 %v1161_v49  ;;  %3089 = vmatprep.subr.bf16.mxu1 %v3276_v17  ;;  %v1200_v49 = vld [vmem:[#allocation3 + $0x170] sm:$0xff] }
 0x159   :  { %1660 = vperm.xlu0 %3247, %v1498_v43   ;;  %1675 = vperm.xlu1 %3248, %v1501_v57   ;;  %v1205_v43 = vld [vmem:[#allocation3 + $0x198] sm:$0xff]  ;;  %v1239_v57 = vld [vmem:[#allocation3 + $0x2a8] sm:$0xff] }
 0x15a   :  { %1968 = vmatmul.mubr.f32.gmra.mrb[50].mxu1 %v1190_v48  ;;  %2313 = vmatmul.mubr.f32.gmra.mrb[42].mxu0 %v1160_v54  ;;  %v1521_v48 = vld [vmem:[%s4328_s3 + $0x178] sm:$0xff]  ;;  %v1520_v54 = vld [vmem:[%s4328_s3 + $0x170] sm:$0xff] }
 0x15b   :  { %3105 = vmatpush1.bf16.msra.mxu1 %v3788_v58  ;;  %1972 = vmatprep.mubr.f32.mxu1 %v1195_v55  ;;  %v1502_v58 = vld [vmem:[%s4328_s3 + $0xe0] sm:$0xff] }
 0x15c   :  { %2317 = vmatprep.mubr.f32.mxu0 %v1165_v56  ;;  %3090 = vmatprep.subr.bf16.mxu1 %v3276_v17  ;;  %v1234_v55 = vld [vmem:[#allocation3 + $0x280] sm:$0xff]  ;;  %v1204_v56 = vld [vmem:[#allocation3 + $0x190] sm:$0xff] }
 0x15d   :  { %1670 = vperm.xlu0 %3247, %v1500_v52   ;;  %1685 = vperm.xlu1 %3248, %v1503_v53   ;;  %v1209_v52 = vld [vmem:[#allocation3 + $0x1b8] sm:$0xff]  ;;  %v1243_v53 = vld [vmem:[#allocation3 + $0x2c8] sm:$0xff] }
 0x15e   :  { %1973 = vmatmul.mubr.f32.gmra.mrb[52].mxu1 %v1194_v59  ;;  %2318 = vmatmul.mubr.f32.gmra.mrb[44].mxu0 %v1164_v60  ;;  %v1523_v59 = vld [vmem:[%s4328_s3 + $0x188] sm:$0xff]  ;;  %v1522_v60 = vld [vmem:[%s4328_s3 + $0x180] sm:$0xff] }
 0x15f   :  { %3106 = vmatpush1.bf16.msra.mxu1 %v3800_v7  ;;  %1977 = vmatprep.mubr.f32.mxu1 %v1199_v61  ;;  %v1202_v7 = vld [vmem:[#allocation3 + $0x180] sm:$0xff] }
 0x160   :  { %2322 = vmatprep.mubr.f32.mxu0 %v1169_v62  ;;  %3091 = vmatprep.subr.bf16.mxu1 %v3276_v17  ;;  %v1238_v61 = vld [vmem:[#allocation3 + $0x2a0] sm:$0xff]  ;;  %v1208_v62 = vld [vmem:[#allocation3 + $0x1b0] sm:$0xff] }
 0x161   :  { %1680 = vperm.xlu0 %3247, %v1502_v58   ;;  %1695 = vperm.xlu1 %3248, %v1505_v5   ;;  %v1213_v58 = vld [vmem:[#allocation3 + $0x1d8] sm:$0xff]  ;;  %v1247_v5 = vld [vmem:[#allocation3 + $0x2e8] sm:$0xff] }
 0x162   :  { %1978 = vmatmul.mubr.f32.gmra.mrb[54].mxu1 %v1198_v63  ;;  %2323 = vmatmul.mubr.f32.gmra.mrb[46].mxu0 %v1168_v4  ;;  %v1525_v63 = vld [vmem:[%s4328_s3 + $0x198] sm:$0xff]  ;;  %v1524_v4 = vld [vmem:[%s4328_s3 + $0x190] sm:$0xff] }
 0x163   :  { %3107 = vmatpush1.bf16.msra.mxu1 %v3812_v14  ;;  %1982 = vmatprep.mubr.f32.mxu1 %v1203_v0  ;;  %v1176_v14 = vld [vmem:[#allocation3 + $0xb0] sm:$0xff]  ;;  %v1242_v0 = vld [vmem:[#allocation3 + $0x2c0] sm:$0xff] }
 0x164   :  { %2327 = vmatprep.mubr.f32.mxu0 %v1173_v3  ;;  %3092 = vmatprep.subr.bf16.mxu1 %v3276_v17  ;;  %v1212_v3 = vld [vmem:[#allocation3 + $0x1d0] sm:$0xff] }
 0x165   :  { %1690 = vperm.xlu0 %3247, %v1504_v6   ;;  %1705 = vperm.xlu1 %3248, %v1507_v12   ;;  %v1217_v6 = vld [vmem:[#allocation3 + $0x1f8] sm:$0xff]  ;;  %v1251_v12 = vld [vmem:[#allocation3 + $0x308] sm:$0xff] }
 0x166   :  { %1983 = vmatmul.mubr.f32.gmra.mrb[56].mxu1 %v1202_v7  ;;  %2328 = vmatmul.mubr.f32.gmra.mrb[48].mxu0 %v1172_v9  ;;  %v1527_v7 = vld [vmem:[%s4328_s3 + $0x1a8] sm:$0xff]  ;;  %v1526_v9 = vld [vmem:[%s4328_s3 + $0x1a0] sm:$0xff] }
 0x167   :  { %3108 = vmatpush1.bf16.msra.mxu1 %v3824_v22  ;;  %1987 = vmatprep.mubr.f32.mxu1 %v1207_v10  ;;  %v1215_v22 = vld [vmem:[#allocation3 + $0x1e8] sm:$0xff]  ;;  %v1246_v10 = vld [vmem:[#allocation3 + $0x2e0] sm:$0xff] }
 0x168   :  { %2332 = vmatprep.mubr.f32.mxu0 %v1177_v11  ;;  %3093 = vmatprep.subr.bf16.mxu1 %v3276_v17  ;;  %v1216_v11 = vld [vmem:[#allocation3 + $0x1f0] sm:$0xff] }
 0x169   :  { %1700 = vperm.xlu0 %3247, %v1506_v19   ;;  %1715 = vperm.xlu1 %3248, %v1509_v15   ;;  %v1221_v19 = vld [vmem:[#allocation3 + $0x218] sm:$0xff]  ;;  %v1255_v15 = vld [vmem:[#allocation3 + $0x328] sm:$0xff] }
 0x16a   :  { %1988 = vmatmul.mubr.f32.gmra.mrb[58].mxu1 %v1206_v13  ;;  %2333 = vmatmul.mubr.f32.gmra.mrb[50].mxu0 %v1176_v14  ;;  %v1529_v13 = vld [vmem:[%s4328_s3 + $0x1b8] sm:$0xff]  ;;  %v1528_v14 = vld [vmem:[%s4328_s3 + $0x1b0] sm:$0xff] }
 0x16b   :  { %3109 = vmatpush1.bf16.msra.mxu1 %v3836_v16  ;;  %1992 = vmatprep.mubr.f32.mxu1 %v1211_v2  ;;  %v1189_v16 = vld [vmem:[#allocation3 + $0x118] sm:$0xff]  ;;  %v1250_v2 = vld [vmem:[#allocation3 + $0x300] sm:$0xff] }
 0x16c   :  { %2337 = vmatprep.mubr.f32.mxu0 %v1181_v8  ;;  %3094 = vmatprep.subr.bf16.mxu1 %v3276_v17  ;;  %v1220_v8 = vld [vmem:[#allocation3 + $0x210] sm:$0xff] }
 0x16d   :  { %1710 = vperm.xlu0 %3247, %v1508_v20   ;;  %1725 = vperm.xlu1 %3248, %v1511_v24   ;;  %v1225_v20 = vld [vmem:[#allocation3 + $0x238] sm:$0xff]  ;;  %v1259_v24 = vld [vmem:[#allocation3 + $0x348] sm:$0xff] }
 0x16e   :  { %1993 = vmatmul.mubr.f32.gmra.mrb[60].mxu1 %v1210_v35  ;;  %2338 = vmatmul.mubr.f32.gmra.mrb[52].mxu0 %v1180_v21  ;;  %v1531_v35 = vld [vmem:[%s4328_s3 + $0x1c8] sm:$0xff]  ;;  %v1530_v21 = vld [vmem:[%s4328_s3 + $0x1c0] sm:$0xff] }
 0x16f   :  { %3110 = vmatpush1.bf16.msra.mxu1 %v3848_v36  ;;  %1997 = vmatprep.mubr.f32.mxu1 %v1215_v22  ;;  %v1514_v36 = vld [vmem:[%s4328_s3 + $0x140] sm:$0xff] }
 0x170   :  { %2342 = vmatprep.mubr.f32.mxu0 %v1185_v23  ;;  %3095 = vmatprep.subr.bf16.mxu1 %v3276_v17  ;;  %v1223_v17 = vld [vmem:[#allocation3 + $0x228] sm:$0xff]  ;;  %v1254_v22 = vld [vmem:[#allocation3 + $0x320] sm:$0xff]  ;;  %v1224_v23 = vld [vmem:[#allocation3 + $0x230] sm:$0xff] }
 0x171   :  { %1720 = vperm.xlu0 %3247, %v1510_v26   ;;  %1735 = vperm.xlu1 %3248, %v1513_v29   ;;  %v1229_v26 = vld [vmem:[#allocation3 + $0x258] sm:$0xff]  ;;  %v1263_v29 = vld [vmem:[#allocation3 + $0x368] sm:$0xff] }
 0x172   :  { %1998 = vmatmul.mubr.f32.gmra.mrb[62].mxu1 %v1214_v27  ;;  %2343 = vmatmul.mubr.f32.gmra.mrb[54].mxu0 %v1184_v50  ;;  %v1533_v27 = vld [vmem:[%s4328_s3 + $0x1d8] sm:$0xff]  ;;  %v1532_v50 = vld [vmem:[%s4328_s3 + $0x1d0] sm:$0xff] }
 0x173   :  { %3111 = vmatpush1.bf16.msra.mxu1 %v3860_v40  ;;  %2002 = vmatprep.mubr.f32.mxu1 %v1219_v28  ;;  %v1226_v40 = vld [vmem:[#allocation3 + $0x240] sm:$0xff] }
 0x174   :  { %2347 = vmatprep.mubr.f32.mxu0 %v1189_v16  ;;  %v1258_v28 = vld [vmem:[#allocation3 + $0x340] sm:$0xff]  ;;  %v1228_v16 = vld [vmem:[#allocation3 + $0x250] sm:$0xff] }
 0x175   :  { %1730 = vperm.xlu0 %3247, %v1512_v25   ;;  %1745 = vperm.xlu1 %3248, %v1515_v34   ;;  %v1233_v25 = vld [vmem:[#allocation3 + $0x278] sm:$0xff]  ;;  %v1267_v34 = vld [vmem:[#allocation3 + $0x388] sm:$0xff] }
 0x176   :  { %2003 = vmatmul.mubr.f32.gmra.mrb[64].mxu1 %v1218_v31  ;;  %2348 = vmatmul.mubr.f32.gmra.mrb[56].mxu0 %v1188_v32  ;;  %v1535_v31 = vld [vmem:[%s4328_s3 + $0x1e8] sm:$0xff]  ;;  %v1534_v32 = vld [vmem:[%s4328_s3 + $0x1e0] sm:$0xff] }
 0x177   :  { %2007 = vmatprep.mubr.f32.mxu1 %v1223_v17  ;;  %2352 = vmatprep.mubr.f32.mxu0 %v1193_v1  ;;  %v1262_v17 = vld [vmem:[#allocation3 + $0x360] sm:$0xff]  ;;  %v1232_v1 = vld [vmem:[#allocation3 + $0x270] sm:$0xff] }
 0x179   :  { %1740 = vperm.xlu0 %3247, %v1514_v36   ;;  %1755 = vperm.xlu1 %3248, %v1517_v18   ;;  %v1237_v36 = vld [vmem:[#allocation3 + $0x298] sm:$0xff]  ;;  %v1271_v18 = vld [vmem:[#allocation3 + $0x3a8] sm:$0xff] }
 0x17a   :  { %2008 = vmatmul.mubr.f32.gmra.mrb[66].mxu1 %v1222_v37  ;;  %2353 = vmatmul.mubr.f32.gmra.mrb[58].mxu0 %v1192_v38  ;;  %v1537_v37 = vld [vmem:[%s4328_s3 + $0x1f8] sm:$0xff]  ;;  %v1536_v38 = vld [vmem:[%s4328_s3 + $0x1f0] sm:$0xff] }
 0x17b   :  { %2012 = vmatprep.mubr.f32.mxu1 %v1227_v39  ;;  %2357 = vmatprep.mubr.f32.mxu0 %v1197_v33  ;;  %v1266_v39 = vld [vmem:[#allocation3 + $0x380] sm:$0xff]  ;;  %v1236_v33 = vld [vmem:[#allocation3 + $0x290] sm:$0xff] }
 0x17d   :  { %1750 = vperm.xlu0 %3247, %v1516_v41   ;;  %1765 = vperm.xlu1 %3248, %v1519_v46   ;;  %v1241_v41 = vld [vmem:[#allocation3 + $0x2b8] sm:$0xff]  ;;  %v1274_v46 = vld [vmem:[#allocation3 + $0x3c0] sm:$0xff] }
 0x17e   :  { %2013 = vmatmul.mubr.f32.gmra.mrb[68].mxu1 %v1226_v40  ;;  %2358 = vmatmul.mubr.f32.gmra.mrb[60].mxu0 %v1196_v44  ;;  %v1270_v40 = vld [vmem:[#allocation3 + $0x3a0] sm:$0xff]  ;;  %v1240_v44 = vld [vmem:[#allocation3 + $0x2b0] sm:$0xff] }
 0x17f   :  { %2017 = vmatprep.mubr.f32.mxu1 %v1231_v45  ;;  %2362 = vmatprep.mubr.f32.mxu0 %v1201_v30  ;;  %v1275_v45 = vld [vmem:[#allocation3 + $0x3c8] sm:$0xff]  ;;  %v1245_v30 = vld [vmem:[#allocation3 + $0x2d8] sm:$0xff] }
 0x181   :  { %1760 = vperm.xlu0 %3247, %v1518_v42   ;;  %1775 = vperm.xlu1 %3248, %v1521_v48   ;;  %v1244_v42 = vld [vmem:[#allocation3 + $0x2d0] sm:$0xff]  ;;  %v1283_v48 = vld [vmem:[#allocation3 + $0x408] sm:$0xff] }
 0x182   :  { %2018 = vmatmul.mubr.f32.gmra.mrb[70].mxu1 %v1230_v47  ;;  %2363 = vmatmul.mubr.f32.gmra.mrb[62].mxu0 %v1200_v49  ;;  %v1279_v47 = vld [vmem:[#allocation3 + $0x3e8] sm:$0xff]  ;;  %v1249_v49 = vld [vmem:[#allocation3 + $0x2f8] sm:$0xff] }
 0x183   :  { %2022 = vmatprep.mubr.f32.mxu1 %v1235_v51  ;;  %2367 = vmatprep.mubr.f32.mxu0 %v1205_v43  ;;  %v1278_v51 = vld [vmem:[#allocation3 + $0x3e0] sm:$0xff]  ;;  %v1248_v43 = vld [vmem:[#allocation3 + $0x2f0] sm:$0xff] }
 0x185   :  { %1770 = vperm.xlu0 %3247, %v1520_v54   ;;  %1785 = vperm.xlu1 %3248, %v1523_v59   ;;  %v1253_v54 = vld [vmem:[#allocation3 + $0x318] sm:$0xff]  ;;  %v1286_v59 = vld [vmem:[#allocation3 + $0x420] sm:$0xff] }
 0x186   :  { %2023 = vmatmul.mubr.f32.gmra.mrb[72].mxu1 %v1234_v55  ;;  %2368 = vmatmul.mubr.f32.gmra.mrb[64].mxu0 %v1204_v56  ;;  %v1282_v55 = vld [vmem:[#allocation3 + $0x400] sm:$0xff]  ;;  %v1252_v56 = vld [vmem:[#allocation3 + $0x310] sm:$0xff] }
 0x187   :  { %2027 = vmatprep.mubr.f32.mxu1 %v1239_v57  ;;  %2372 = vmatprep.mubr.f32.mxu0 %v1209_v52  ;;  %v1287_v57 = vld [vmem:[#allocation3 + $0x428] sm:$0xff]  ;;  %v1257_v52 = vld [vmem:[#allocation3 + $0x338] sm:$0xff] }
 0x189   :  { %1780 = vperm.xlu0 %3247, %v1522_v60   ;;  %1795 = vperm.xlu1 %3248, %v1525_v63   ;;  %v1256_v60 = vld [vmem:[#allocation3 + $0x330] sm:$0xff]  ;;  %v1295_v63 = vld [vmem:[#allocation3 + $0x468] sm:$0xff] }
 0x18a   :  { %2028 = vmatmul.mubr.f32.gmra.mrb[74].mxu1 %v1238_v61  ;;  %2373 = vmatmul.mubr.f32.gmra.mrb[66].mxu0 %v1208_v62  ;;  %v1291_v61 = vld [vmem:[#allocation3 + $0x448] sm:$0xff]  ;;  %v1261_v62 = vld [vmem:[#allocation3 + $0x358] sm:$0xff] }
 0x18b   :  { %2032 = vmatprep.mubr.f32.mxu1 %v1243_v53  ;;  %2377 = vmatprep.mubr.f32.mxu0 %v1213_v58  ;;  %v1290_v53 = vld [vmem:[#allocation3 + $0x440] sm:$0xff]  ;;  %v1260_v58 = vld [vmem:[#allocation3 + $0x350] sm:$0xff] }
 0x18d   :  { %1790 = vperm.xlu0 %3247, %v1524_v4   ;;  %1805 = vperm.xlu1 %3248, %v1527_v7   ;;  %v1265_v4 = vld [vmem:[#allocation3 + $0x378] sm:$0xff]  ;;  %v1298_v7 = vld [vmem:[#allocation3 + $0x480] sm:$0xff] }
 0x18e   :  { %2033 = vmatmul.mubr.f32.gmra.mrb[76].mxu1 %v1242_v0  ;;  %2378 = vmatmul.mubr.f32.gmra.mrb[68].mxu0 %v1212_v3  ;;  %v1294_v0 = vld [vmem:[#allocation3 + $0x460] sm:$0xff]  ;;  %v1264_v3 = vld [vmem:[#allocation3 + $0x370] sm:$0xff] }
 0x18f   :  { %2037 = vmatprep.mubr.f32.mxu1 %v1247_v5  ;;  %2382 = vmatprep.mubr.f32.mxu0 %v1217_v6  ;;  %v1299_v5 = vld [vmem:[#allocation3 + $0x488] sm:$0xff]  ;;  %v1269_v6 = vld [vmem:[#allocation3 + $0x398] sm:$0xff] }
 0x191   :  { %1800 = vperm.xlu0 %3247, %v1526_v9   ;;  %1815 = vperm.xlu1 %3248, %v1529_v13   ;;  %v1268_v9 = vld [vmem:[#allocation3 + $0x390] sm:$0xff]  ;;  %v1307_v13 = vld [vmem:[#allocation3 + $0x4c8] sm:$0xff] }
 0x192   :  { %2038 = vmatmul.mubr.f32.gmra.mrb[78].mxu1 %v1246_v10  ;;  %2383 = vmatmul.mubr.f32.gmra.mrb[70].mxu0 %v1216_v11  ;;  %v1303_v10 = vld [vmem:[#allocation3 + $0x4a8] sm:$0xff]  ;;  %v1273_v11 = vld [vmem:[#allocation3 + $0x3b8] sm:$0xff] }
 0x193   :  { %2042 = vmatprep.mubr.f32.mxu1 %v1251_v12  ;;  %2387 = vmatprep.mubr.f32.mxu0 %v1221_v19  ;;  %v1302_v12 = vld [vmem:[#allocation3 + $0x4a0] sm:$0xff]  ;;  %v1272_v19 = vld [vmem:[#allocation3 + $0x3b0] sm:$0xff] }
 0x195   :  { %1810 = vperm.xlu0 %3247, %v1528_v14   ;;  %1825 = vperm.xlu1 %3248, %v1531_v35   ;;  %v1277_v14 = vld [vmem:[#allocation3 + $0x3d8] sm:$0xff]  ;;  %v1310_v35 = vld [vmem:[#allocation3 + $0x4e0] sm:$0xff] }
 0x196   :  { %2043 = vmatmul.mubr.f32.gmra.mrb[80].mxu1 %v1250_v2  ;;  %2388 = vmatmul.mubr.f32.gmra.mrb[72].mxu0 %v1220_v8  ;;  %v1306_v2 = vld [vmem:[#allocation3 + $0x4c0] sm:$0xff]  ;;  %v1276_v8 = vld [vmem:[#allocation3 + $0x3d0] sm:$0xff] }
 0x197   :  { %2047 = vmatprep.mubr.f32.mxu1 %v1255_v15  ;;  %2392 = vmatprep.mubr.f32.mxu0 %v1225_v20  ;;  %v1311_v15 = vld [vmem:[#allocation3 + $0x4e8] sm:$0xff]  ;;  %v1281_v20 = vld [vmem:[#allocation3 + $0x3f8] sm:$0xff] }
 0x199   :  { %1820 = vperm.xlu0 %3247, %v1530_v21   ;;  %1835 = vperm.xlu1 %3248, %v1533_v27   ;;  %v1280_v21 = vld [vmem:[#allocation3 + $0x3f0] sm:$0xff]  ;;  %v1319_v27 = vld [vmem:[#allocation3 + $0x528] sm:$0xff] }
 0x19a   :  { %2048 = vmatmul.mubr.f32.gmra.mrb[82].mxu1 %v1254_v22  ;;  %2393 = vmatmul.mubr.f32.gmra.mrb[74].mxu0 %v1224_v23  ;;  %v1315_v22 = vld [vmem:[#allocation3 + $0x508] sm:$0xff]  ;;  %v1285_v23 = vld [vmem:[#allocation3 + $0x418] sm:$0xff] }
 0x19b   :  { %2052 = vmatprep.mubr.f32.mxu1 %v1259_v24  ;;  %2397 = vmatprep.mubr.f32.mxu0 %v1229_v26  ;;  %v1314_v24 = vld [vmem:[#allocation3 + $0x500] sm:$0xff]  ;;  %v1284_v26 = vld [vmem:[#allocation3 + $0x410] sm:$0xff] }
 0x19d   :  { %1830 = vperm.xlu0 %3247, %v1532_v50   ;;  %1845 = vperm.xlu1 %3248, %v1535_v31   ;;  %v1289_v50 = vld [vmem:[#allocation3 + $0x438] sm:$0xff]  ;;  %v1322_v31 = vld [vmem:[#allocation3 + $0x540] sm:$0xff] }
 0x19e   :  { %2053 = vmatmul.mubr.f32.gmra.mrb[84].mxu1 %v1258_v28  ;;  %2398 = vmatmul.mubr.f32.gmra.mrb[76].mxu0 %v1228_v16  ;;  %v1318_v28 = vld [vmem:[#allocation3 + $0x520] sm:$0xff]  ;;  %v1288_v16 = vld [vmem:[#allocation3 + $0x430] sm:$0xff] }
 0x19f   :  { %2057 = vmatprep.mubr.f32.mxu1 %v1263_v29  ;;  %2402 = vmatprep.mubr.f32.mxu0 %v1233_v25  ;;  %v1323_v29 = vld [vmem:[#allocation3 + $0x548] sm:$0xff]  ;;  %v1293_v25 = vld [vmem:[#allocation3 + $0x458] sm:$0xff] }
 0x1a1   :  { %1840 = vperm.xlu0 %3247, %v1534_v32   ;;  %1855 = vperm.xlu1 %3248, %v1537_v37   ;;  %v1292_v32 = vld [vmem:[#allocation3 + $0x450] sm:$0xff]  ;;  %v1331_v37 = vld [vmem:[#allocation3 + $0x588] sm:$0xff] }
 0x1a2   :  { %2058 = vmatmul.mubr.f32.gmra.mrb[86].mxu1 %v1262_v17  ;;  %2403 = vmatmul.mubr.f32.gmra.mrb[78].mxu0 %v1232_v1  ;;  %v1327_v17 = vld [vmem:[#allocation3 + $0x568] sm:$0xff]  ;;  %v1297_v1 = vld [vmem:[#allocation3 + $0x478] sm:$0xff] }
 0x1a3   :  { %2062 = vmatprep.mubr.f32.mxu1 %v1267_v34  ;;  %2407 = vmatprep.mubr.f32.mxu0 %v1237_v36  ;;  %v1326_v34 = vld [vmem:[#allocation3 + $0x560] sm:$0xff]  ;;  %v1296_v36 = vld [vmem:[#allocation3 + $0x470] sm:$0xff] }
 0x1a5   :  { %1850 = vperm.xlu0 %3247, %v1536_v38   ;;  %v1301_v38 = vld [vmem:[#allocation3 + $0x498] sm:$0xff] }
 0x1a6   :  { %2063 = vmatmul.mubr.f32.gmra.mrb[88].mxu1 %v1266_v39  ;;  %2408 = vmatmul.mubr.f32.gmra.mrb[80].mxu0 %v1236_v33  ;;  %v1330_v39 = vld [vmem:[#allocation3 + $0x580] sm:$0xff]  ;;  %v1300_v33 = vld [vmem:[#allocation3 + $0x490] sm:$0xff] }
 0x1a7   :  { %2067 = vmatprep.mubr.f32.mxu1 %v1271_v18  ;;  %2412 = vmatprep.mubr.f32.mxu0 %v1241_v41  ;;  %v1335_v18 = vld [vmem:[#allocation3 + $0x5a8] sm:$0xff]  ;;  %v1305_v41 = vld [vmem:[#allocation3 + $0x4b8] sm:$0xff] }
 0x1aa   :  { %2068 = vmatmul.mubr.f32.gmra.mrb[90].mxu1 %v1270_v40  ;;  %2413 = vmatmul.mubr.f32.gmra.mrb[82].mxu0 %v1240_v44  ;;  %v1334_v40 = vld [vmem:[#allocation3 + $0x5a0] sm:$0xff]  ;;  %v1304_v44 = vld [vmem:[#allocation3 + $0x4b0] sm:$0xff] }
 0x1ab   :  { %2072 = vmatprep.mubr.f32.mxu1 %v1275_v45  ;;  %2417 = vmatprep.mubr.f32.mxu0 %v1245_v30  ;;  %v1339_v45 = vld [vmem:[#allocation3 + $0x5c8] sm:$0xff]  ;;  %v1309_v30 = vld [vmem:[#allocation3 + $0x4d8] sm:$0xff] }
 0x1ae   :  { %2073 = vmatmul.mubr.f32.gmra.mrb[92].mxu1 %v1274_v46  ;;  %2418 = vmatmul.mubr.f32.gmra.mrb[84].mxu0 %v1244_v42  ;;  %v1338_v46 = vld [vmem:[#allocation3 + $0x5c0] sm:$0xff]  ;;  %v1308_v42 = vld [vmem:[#allocation3 + $0x4d0] sm:$0xff] }
 0x1af   :  { %2077 = vmatprep.mubr.f32.mxu1 %v1279_v47  ;;  %2422 = vmatprep.mubr.f32.mxu0 %v1249_v49  ;;  %v1343_v47 = vld [vmem:[#allocation3 + $0x5e8] sm:$0xff]  ;;  %v1313_v49 = vld [vmem:[#allocation3 + $0x4f8] sm:$0xff] }
 0x1b2   :  { %2078 = vmatmul.mubr.f32.gmra.mrb[94].mxu1 %v1278_v51  ;;  %2423 = vmatmul.mubr.f32.gmra.mrb[86].mxu0 %v1248_v43  ;;  %v1342_v51 = vld [vmem:[#allocation3 + $0x5e0] sm:$0xff]  ;;  %v1312_v43 = vld [vmem:[#allocation3 + $0x4f0] sm:$0xff] }
 0x1b3   :  { %2082 = vmatprep.mubr.f32.mxu1 %v1283_v48  ;;  %2427 = vmatprep.mubr.f32.mxu0 %v1253_v54  ;;  %v1347_v48 = vld [vmem:[#allocation3 + $0x608] sm:$0xff]  ;;  %v1317_v54 = vld [vmem:[#allocation3 + $0x518] sm:$0xff] }
 0x1b6   :  { %2083 = vmatmul.mubr.f32.gmra.mrb[96].mxu1 %v1282_v55  ;;  %2428 = vmatmul.mubr.f32.gmra.mrb[88].mxu0 %v1252_v56  ;;  %v1346_v55 = vld [vmem:[#allocation3 + $0x600] sm:$0xff]  ;;  %v1316_v56 = vld [vmem:[#allocation3 + $0x510] sm:$0xff] }
 0x1b7   :  { %2087 = vmatprep.mubr.f32.mxu1 %v1287_v57  ;;  %2432 = vmatprep.mubr.f32.mxu0 %v1257_v52  ;;  %v1351_v57 = vld [vmem:[#allocation3 + $0x628] sm:$0xff]  ;;  %v1321_v52 = vld [vmem:[#allocation3 + $0x538] sm:$0xff] }
 0x1ba   :  { %2088 = vmatmul.mubr.f32.gmra.mrb[98].mxu1 %v1286_v59  ;;  %2433 = vmatmul.mubr.f32.gmra.mrb[90].mxu0 %v1256_v60  ;;  %v1350_v59 = vld [vmem:[#allocation3 + $0x620] sm:$0xff]  ;;  %v1320_v60 = vld [vmem:[#allocation3 + $0x530] sm:$0xff] }
 0x1bb   :  { %2092 = vmatprep.mubr.f32.mxu1 %v1291_v61  ;;  %2437 = vmatprep.mubr.f32.mxu0 %v1261_v62  ;;  %v1355_v61 = vld [vmem:[#allocation3 + $0x648] sm:$0xff]  ;;  %v1325_v62 = vld [vmem:[#allocation3 + $0x558] sm:$0xff] }
 0x1be   :  { %2093 = vmatmul.mubr.f32.gmra.mrb[100].mxu1 %v1290_v53  ;;  %2438 = vmatmul.mubr.f32.gmra.mrb[92].mxu0 %v1260_v58  ;;  %v1354_v53 = vld [vmem:[#allocation3 + $0x640] sm:$0xff]  ;;  %v1324_v58 = vld [vmem:[#allocation3 + $0x550] sm:$0xff] }
 0x1bf   :  { %2097 = vmatprep.mubr.f32.mxu1 %v1295_v63  ;;  %2442 = vmatprep.mubr.f32.mxu0 %v1265_v4  ;;  %v1359_v63 = vld [vmem:[#allocation3 + $0x668] sm:$0xff]  ;;  %v1329_v4 = vld [vmem:[#allocation3 + $0x578] sm:$0xff] }
 0x1c2   :  { %2098 = vmatmul.mubr.f32.gmra.mrb[102].mxu1 %v1294_v0  ;;  %2443 = vmatmul.mubr.f32.gmra.mrb[94].mxu0 %v1264_v3  ;;  %v1358_v0 = vld [vmem:[#allocation3 + $0x660] sm:$0xff]  ;;  %v1328_v3 = vld [vmem:[#allocation3 + $0x570] sm:$0xff] }
 0x1c3   :  { %2102 = vmatprep.mubr.f32.mxu1 %v1299_v5  ;;  %2447 = vmatprep.mubr.f32.mxu0 %v1269_v6  ;;  %v1363_v5 = vld [vmem:[#allocation3 + $0x688] sm:$0xff]  ;;  %v1333_v6 = vld [vmem:[#allocation3 + $0x598] sm:$0xff] }
 0x1c6   :  { %2103 = vmatmul.mubr.f32.gmra.mrb[104].mxu1 %v1298_v7  ;;  %2448 = vmatmul.mubr.f32.gmra.mrb[96].mxu0 %v1268_v9  ;;  %v1362_v7 = vld [vmem:[#allocation3 + $0x680] sm:$0xff]  ;;  %v1332_v9 = vld [vmem:[#allocation3 + $0x590] sm:$0xff] }
 0x1c7   :  { %2107 = vmatprep.mubr.f32.mxu1 %v1303_v10  ;;  %2452 = vmatprep.mubr.f32.mxu0 %v1273_v11  ;;  %v1367_v10 = vld [vmem:[#allocation3 + $0x6a8] sm:$0xff]  ;;  %v1337_v11 = vld [vmem:[#allocation3 + $0x5b8] sm:$0xff] }
 0x1ca   :  { %2108 = vmatmul.mubr.f32.gmra.mrb[106].mxu1 %v1302_v12  ;;  %2453 = vmatmul.mubr.f32.gmra.mrb[98].mxu0 %v1272_v19  ;;  %v1366_v12 = vld [vmem:[#allocation3 + $0x6a0] sm:$0xff]  ;;  %v1336_v19 = vld [vmem:[#allocation3 + $0x5b0] sm:$0xff] }
 0x1cb   :  { %2112 = vmatprep.mubr.f32.mxu1 %v1307_v13  ;;  %2457 = vmatprep.mubr.f32.mxu0 %v1277_v14  ;;  %v1371_v13 = vld [vmem:[#allocation3 + $0x6c8] sm:$0xff]  ;;  %v1341_v14 = vld [vmem:[#allocation3 + $0x5d8] sm:$0xff] }
 0x1ce   :  { %2113 = vmatmul.mubr.f32.gmra.mrb[108].mxu1 %v1306_v2  ;;  %2458 = vmatmul.mubr.f32.gmra.mrb[100].mxu0 %v1276_v8 }
 0x1cf   :  { %2117 = vmatprep.mubr.f32.mxu1 %v1311_v15  ;;  %2462 = vmatprep.mubr.f32.mxu0 %v1281_v20  ;;  %v1370_v15 = vld [vmem:[#allocation3 + $0x6c0] sm:$0xff]  ;;  %v1340_v20 = vld [vmem:[#allocation3 + $0x5d0] sm:$0xff] }
 0x1d2   :  { %2118 = vmatmul.mubr.f32.gmra.mrb[110].mxu1 %v1310_v35  ;;  %2463 = vmatmul.mubr.f32.gmra.mrb[102].mxu0 %v1280_v21  ;;  %v1375_v35 = vld [vmem:[#allocation3 + $0x6e8] sm:$0xff]  ;;  %v1345_v21 = vld [vmem:[#allocation3 + $0x5f8] sm:$0xff] }
 0x1d3   :  { %2122 = vmatprep.mubr.f32.mxu1 %v1315_v22  ;;  %2467 = vmatprep.mubr.f32.mxu0 %v1285_v23 }
 0x1d6   :  { %2123 = vmatmul.mubr.f32.gmra.mrb[112].mxu1 %v1314_v24  ;;  %2468 = vmatmul.mubr.f32.gmra.mrb[104].mxu0 %v1284_v26  ;;  %v1374_v24 = vld [vmem:[#allocation3 + $0x6e0] sm:$0xff]  ;;  %v1344_v26 = vld [vmem:[#allocation3 + $0x5f0] sm:$0xff] }
 0x1d7   :  { %2127 = vmatprep.mubr.f32.mxu1 %v1319_v27  ;;  %2472 = vmatprep.mubr.f32.mxu0 %v1289_v50  ;;  %v1379_v27 = vld [vmem:[#allocation3 + $0x708] sm:$0xff]  ;;  %v1349_v50 = vld [vmem:[#allocation3 + $0x618] sm:$0xff] }
 0x1da   :  { %2128 = vmatmul.mubr.f32.gmra.mrb[114].mxu1 %v1318_v28  ;;  %2473 = vmatmul.mubr.f32.gmra.mrb[106].mxu0 %v1288_v16 }
 0x1db   :  { %2132 = vmatprep.mubr.f32.mxu1 %v1323_v29  ;;  %2477 = vmatprep.mubr.f32.mxu0 %v1293_v25  ;;  %v1378_v29 = vld [vmem:[#allocation3 + $0x700] sm:$0xff]  ;;  %v1348_v25 = vld [vmem:[#allocation3 + $0x610] sm:$0xff] }
 0x1de   :  { %2133 = vmatmul.mubr.f32.gmra.mrb[116].mxu1 %v1322_v31  ;;  %2478 = vmatmul.mubr.f32.gmra.mrb[108].mxu0 %v1292_v32  ;;  %v1383_v31 = vld [vmem:[#allocation3 + $0x728] sm:$0xff]  ;;  %v1353_v32 = vld [vmem:[#allocation3 + $0x638] sm:$0xff] }
 0x1df   :  { %2137 = vmatprep.mubr.f32.mxu1 %v1327_v17  ;;  %2482 = vmatprep.mubr.f32.mxu0 %v1297_v1 }
 0x1e2   :  { %2138 = vmatmul.mubr.f32.gmra.mrb[118].mxu1 %v1326_v34  ;;  %2483 = vmatmul.mubr.f32.gmra.mrb[110].mxu0 %v1296_v36  ;;  %v1382_v34 = vld [vmem:[#allocation3 + $0x720] sm:$0xff]  ;;  %v1352_v36 = vld [vmem:[#allocation3 + $0x630] sm:$0xff] }
 0x1e3   :  { %2142 = vmatprep.mubr.f32.mxu1 %v1331_v37  ;;  %2487 = vmatprep.mubr.f32.mxu0 %v1301_v38  ;;  %v1387_v37 = vld [vmem:[#allocation3 + $0x748] sm:$0xff]  ;;  %v1357_v38 = vld [vmem:[#allocation3 + $0x658] sm:$0xff] }
 0x1e6   :  { %2143 = vmatmul.mubr.f32.gmra.mrb[120].mxu1 %v1330_v39  ;;  %2488 = vmatmul.mubr.f32.gmra.mrb[112].mxu0 %v1300_v33 }
 0x1e7   :  { %2147 = vmatprep.mubr.f32.mxu1 %v1335_v18  ;;  %2492 = vmatprep.mubr.f32.mxu0 %v1305_v41  ;;  %v1386_v18 = vld [vmem:[#allocation3 + $0x740] sm:$0xff]  ;;  %v1356_v41 = vld [vmem:[#allocation3 + $0x650] sm:$0xff] }
 0x1ea   :  { %2148 = vmatmul.mubr.f32.gmra.mrb[122].mxu1 %v1334_v40  ;;  %2493 = vmatmul.mubr.f32.gmra.mrb[114].mxu0 %v1304_v44  ;;  %v1391_v40 = vld [vmem:[#allocation3 + $0x768] sm:$0xff]  ;;  %v1361_v44 = vld [vmem:[#allocation3 + $0x678] sm:$0xff] }
 0x1eb   :  { %2152 = vmatprep.mubr.f32.mxu1 %v1339_v45  ;;  %2497 = vmatprep.mubr.f32.mxu0 %v1309_v30  ;;  %v1541_v45 = vpop.permute.xlu0 %1540 }
 0x1ee   :  { %2153 = vmatmul.mubr.f32.gmra.mrb[124].mxu1 %v1338_v46  ;;  %2498 = vmatmul.mubr.f32.gmra.mrb[116].mxu0 %v1308_v42  ;;  %v1551_v46 = vpop.permute.xlu1 %1550 }
 0x1ef   :  { %2157 = vmatprep.mubr.f32.mxu1 %v1343_v47  ;;  %2502 = vmatprep.mubr.f32.mxu0 %v1313_v49  ;;  %v1390_v47 = vld [vmem:[#allocation3 + $0x760] sm:$0xff]  ;;  %v1360_v49 = vld [vmem:[#allocation3 + $0x670] sm:$0xff] }
 0x1f2   :  { %2158 = vmatmul.mubr.f32.gmra.mrb[126].mxu1 %v1342_v51  ;;  %2503 = vmatmul.mubr.f32.gmra.mrb[118].mxu0 %v1312_v43  ;;  %v1395_v51 = vld [vmem:[#allocation3 + $0x788] sm:$0xff]  ;;  %v1365_v43 = vld [vmem:[#allocation3 + $0x698] sm:$0xff] }
 0x1f3   :  { %2162 = vmatprep.mubr.f32.mxu1 %v1347_v48  ;;  %2507 = vmatprep.mubr.f32.mxu0 %v1317_v54 }
 0x1f6   :  { %2163 = vmatmul.mubr.f32.gmra.mrb[128].mxu1 %v1346_v55  ;;  %2508 = vmatmul.mubr.f32.gmra.mrb[120].mxu0 %v1316_v56  ;;  %v1394_v55 = vld [vmem:[#allocation3 + $0x780] sm:$0xff]  ;;  %v1364_v56 = vld [vmem:[#allocation3 + $0x690] sm:$0xff] }
 0x1f7   :  { %2167 = vmatprep.mubr.f32.mxu1 %v1351_v57  ;;  %2512 = vmatprep.mubr.f32.mxu0 %v1321_v52  ;;  %v1546_v57 = vpop.permute.xlu0 %1545  ;;  %v1556_v52 = vpop.permute.xlu1 %1555 }
 0x1fa   :  { %2168 = vmatmul.mubr.f32.gmra.mrb[130].mxu1 %v1350_v59  ;;  %2513 = vmatmul.mubr.f32.gmra.mrb[122].mxu0 %v1320_v60  ;;  %v1399_v59 = vld [vmem:[#allocation3 + $0x7a8] sm:$0xff]  ;;  %v1369_v60 = vld [vmem:[#allocation3 + $0x6b8] sm:$0xff] }
 0x1fb   :  { %2172 = vmatprep.mubr.f32.mxu1 %v1355_v61  ;;  %2517 = vmatprep.mubr.f32.mxu0 %v1325_v62 }
 0x1fe   :  { %2173 = vmatmul.mubr.f32.gmra.mrb[132].mxu1 %v1354_v53  ;;  %2518 = vmatmul.mubr.f32.gmra.mrb[124].mxu0 %v1324_v58  ;;  %v1398_v53 = vld [vmem:[#allocation3 + $0x7a0] sm:$0xff]  ;;  %v1368_v58 = vld [vmem:[#allocation3 + $0x6b0] sm:$0xff] }
 0x1ff   :  { %2177 = vmatprep.mubr.f32.mxu1 %v1359_v63  ;;  %2522 = vmatprep.mubr.f32.mxu0 %v1329_v4  ;;  %v4023_v4 = vpop.permute.xlu0 %1560 }
 0x202   :  { %2178 = vmatmul.mubr.f32.gmra.mrb[134].mxu1 %v1358_v0  ;;  %2523 = vmatmul.mubr.f32.gmra.mrb[126].mxu0 %v1328_v3  ;;  %v1403_v0 = vld [vmem:[#allocation3 + $0x7c8] sm:$0xff]  ;;  %v1373_v3 = vld [vmem:[#allocation3 + $0x6d8] sm:$0xff] }
 0x203   :  { %2182 = vmatprep.mubr.f32.mxu1 %v1363_v5  ;;  %2527 = vmatprep.mubr.f32.mxu0 %v1333_v6  ;;  %v4025_v5 = vpop.permute.xlu1 %1565 }
 0x206   :  { %2183 = vmatmul.mubr.f32.gmra.mrb[136].mxu1 %v1362_v7  ;;  %2528 = vmatmul.mubr.f32.gmra.mrb[128].mxu0 %v1332_v9 }
 0x207   :  { %2187 = vmatprep.mubr.f32.mxu1 %v1367_v10  ;;  %2532 = vmatprep.mubr.f32.mxu0 %v1337_v11 }
 0x209   :  { %v4006_v2 = vpop.f32.mrb[32].mxu1 }
 0x20a   :  { %2188 = vmatmul.mubr.f32.gmra.mrb[138].mxu1 %v1366_v12  ;;  %2533 = vmatmul.mubr.f32.gmra.mrb[130].mxu0 %v1336_v19  ;;  %v1926_v8 = vpop.f32.mrb[33].mxu1  ;;  %v1925_v63 = vadd.f32 %v4006_v2, %v1541_v45  ;;  %v1402_v12 = vld [vmem:[#allocation3 + $0x7c0] sm:$0xff]  ;;  %v1372_v19 = vld [vmem:[#allocation3 + $0x6d0] sm:$0xff]  ;;  %v1377_v2 = vld [vmem:[#allocation3 + $0x6f8] sm:$0xff] }
 0x20b   :  { %2192 = vmatprep.mubr.f32.mxu1 %v1371_v13  ;;  %2537 = vmatprep.mubr.f32.mxu0 %v1341_v14  ;;  %v1407_v14 = vld [vmem:[#allocation3 + $0x7e8] sm:$0xff]  ;;  %v4034_v8 = vpop.permute.xlu0 %1570 }
 0x20d   :  { %v4008_v22 = vpop.f32.mrb[34].mxu1 }
 0x20e   :  { %2193 = vmatmul.mubr.f32.gmra.mrb[140].mxu1 %v1370_v15  ;;  %2538 = vmatmul.mubr.f32.gmra.mrb[132].mxu0 %v1340_v20  ;;  %v1931_v23 = vpop.f32.mrb[35].mxu1  ;;  %v1930_v13 = vadd.f32 %v4008_v22, %v1546_v57  ;;  %v1406_v22 = vld [vmem:[#allocation3 + $0x7e0] sm:$0xff]  ;;  %v1388_v57 = vld [vmem:[#allocation3 + $0x750] sm:$0xff] }
 0x20f   :  { %2197 = vmatprep.mubr.f32.mxu1 %v1375_v35  ;;  %2542 = vmatprep.mubr.f32.mxu0 %v1345_v21 }
 0x211   :  { %v4010_v28 = vpop.f32.mrb[36].mxu1 }
 0x212   :  { %2198 = vmatmul.mubr.f32.gmra.mrb[142].mxu1 %v1374_v24  ;;  %2543 = vmatmul.mubr.f32.gmra.mrb[134].mxu0 %v1344_v26  ;;  %v1936_v16 = vpop.f32.mrb[37].mxu1  ;;  %v1376_v24 = vld [vmem:[#allocation3 + $0x6f0] sm:$0xff]  ;;  %v1935_v26 = vadd.f32 %v4010_v28, %v1551_v46 }
 0x213   :  { %2202 = vmatprep.mubr.f32.mxu1 %v1379_v27  ;;  %2547 = vmatprep.mubr.f32.mxu0 %v1349_v50  ;;  %v4043_v27 = vpop.permute.xlu1 %1575  ;;  %v1381_v50 = vld [vmem:[#allocation3 + $0x718] sm:$0xff]  ;;  %v1380_v28 = vld [vmem:[#allocation3 + $0x710] sm:$0xff] }
 0x214   :  { %v1405_v16 = vld [vmem:[#allocation3 + $0x7d8] sm:$0xff]  ;;  %v1408_v46 = vld [vmem:[#allocation3 + $0x7f0] sm:$0xff] }
 0x215   :  { %v4012_v17 = vpop.f32.mrb[38].mxu1 }
 0x216   :  { %2203 = vmatmul.mubr.f32.gmra.mrb[144].mxu1 %v1378_v29  ;;  %2548 = vmatmul.mubr.f32.gmra.mrb[136].mxu0 %v1348_v25  ;;  %v1941_v1 = vpop.f32.mrb[39].mxu1 }
 0x217   :  { %2207 = vmatprep.mubr.f32.mxu1 %v1383_v31  ;;  %2552 = vmatprep.mubr.f32.mxu0 %v1353_v32 }
 0x219   :  { %v4014_v39 = vpop.f32.mrb[40].mxu1 }
 0x21a   :  { %2208 = vmatmul.mubr.f32.gmra.mrb[146].mxu1 %v1382_v34  ;;  %2553 = vmatmul.mubr.f32.gmra.mrb[138].mxu0 %v1352_v36  ;;  %v1946_v33 = vpop.f32.mrb[41].mxu1  ;;  %v1404_v34 = vld [vmem:[#allocation3 + $0x7d0] sm:$0xff]  ;;  %v1940_v36 = vadd.f32 %v4012_v17, %v1556_v52 }
 0x21b   :  { %2212 = vmatprep.mubr.f32.mxu1 %v1387_v37  ;;  %2557 = vmatprep.mubr.f32.mxu0 %v1357_v38  ;;  %v4052_v37 = vpop.permute.xlu0 %1580  ;;  %v1385_v38 = vld [vmem:[#allocation3 + $0x738] sm:$0xff]  ;;  %v1384_v17 = vld [vmem:[#allocation3 + $0x730] sm:$0xff] }
 0x21c   :  { %v1409_v33 = vld [vmem:[#allocation3 + $0x7f8] sm:$0xff] }
 0x21d   :  { %v4016_v30 = vpop.f32.mrb[42].mxu1 }
 0x21e   :  { %2213 = vmatmul.mubr.f32.gmra.mrb[148].mxu1 %v1386_v18  ;;  %2558 = vmatmul.mubr.f32.gmra.mrb[140].mxu0 %v1356_v41  ;;  %v1951_v42 = vpop.f32.mrb[43].mxu1 }
 0x21f   :  { %2217 = vmatprep.mubr.f32.mxu1 %v1391_v40  ;;  %2562 = vmatprep.mubr.f32.mxu0 %v1361_v44  ;;  %v1945_v42 = vadd.f32 %v4014_v39, %v4023_v4  ;;  %v1950_v39 = vadd.f32 %v4016_v30, %v4025_v5  ;;  %v1591_v52 = vpop.permute.xlu0 %1590  ;;  %v1392_v4 = vld [vmem:[#allocation3 + $0x770] sm:$0xff] }
 0x221   :  { %v4018_v48 = vpop.f32.mrb[44].mxu1 }
 0x222   :  { %2218 = vmatmul.mubr.f32.gmra.mrb[150].mxu1 %v1390_v47  ;;  %2563 = vmatmul.mubr.f32.gmra.mrb[142].mxu0 %v1360_v49  ;;  %v1956_v54 = vpop.f32.mrb[45].mxu1  ;;  %v1586_v47 = vpop.permute.xlu1 %1585  ;;  %v1389_v49 = vld [vmem:[#allocation3 + $0x758] sm:$0xff] }
 0x223   :  { %2222 = vmatprep.mubr.f32.mxu1 %v1395_v51  ;;  %2567 = vmatprep.mubr.f32.mxu0 %v1365_v43 }
 0x225   :  { %v4020_v61 = vpop.f32.mrb[46].mxu1 }
 0x226   :  { %2223 = vmatmul.mubr.f32.gmra.mrb[152].mxu1 %v1394_v55  ;;  %2568 = vmatmul.mubr.f32.gmra.mrb[144].mxu0 %v1364_v56  ;;  %v1961_v62 = vpop.f32.mrb[47].mxu1  ;;  %v1596_v30 = vpop.permute.xlu1 %1595 }
 0x227   :  { %2227 = vmatprep.mubr.f32.mxu1 %v1399_v59  ;;  %2572 = vmatprep.mubr.f32.mxu0 %v1369_v60  ;;  %v1393_v59 = vld [vmem:[#allocation3 + $0x778] sm:$0xff] }
 0x229   :  { %v2309_v6 = vpop.f32.mrb[40].mxu0  ;;  %v4027_v7 = vpop.f32.mrb[48].mxu1 }
 0x22a   :  { %v2310_v9 = vadd.f32 %v2309_v6, %v1925_v63  ;;  %2228 = vmatmul.mubr.f32.gmra.mrb[154].mxu1 %v1398_v53  ;;  %v2311_v10 = vpop.f32.mrb[41].mxu0  ;;  %2573 = vmatmul.mubr.f32.gmra.mrb[146].mxu0 %v1368_v58  ;;  %v1966_v11 = vpop.f32.mrb[49].mxu1 }
 0x22b   :  { %2232 = vmatprep.mubr.f32.mxu1 %v1403_v0  ;;  %2577 = vmatprep.mubr.f32.mxu0 %v1373_v3  ;;  %v1955_v0 = vadd.f32 %v4018_v48, %v4034_v8  ;;  %v1397_v3 = vld [vmem:[#allocation3 + $0x798] sm:$0xff]  ;;  %v1601_v48 = vpop.permute.xlu0 %1600 }
 0x22c   :  { %2628 = vst.msk [vmem:[%s4329_s4] sm:$0xff] %vm40_vm0, %v2310_v9 }
 0x22d   :  { %v2314_v15 = vpop.f32.mrb[42].mxu0  ;;  %v4036_v20 = vpop.f32.mrb[50].mxu1 }
 0x22e   :  { %v2315_v35 = vadd.f32 %v2314_v15, %v1930_v13  ;;  %2233 = vmatmul.mubr.f32.gmra.mrb[156].mxu1 %v1402_v12  ;;  %v2316_v21 = vpop.f32.mrb[43].mxu0  ;;  %2578 = vmatmul.mubr.f32.gmra.mrb[148].mxu0 %v1372_v19  ;;  %v1971_v23 = vpop.f32.mrb[51].mxu1  ;;  %v1396_v12 = vld [vmem:[#allocation3 + $0x790] sm:$0xff]  ;;  %v1960_v19 = vadd.f32 %v4020_v61, %v4043_v27  ;;  %v1401_v13 = vld [vmem:[#allocation3 + $0x7b8] sm:$0xff] }
 0x22f   :  { %2237 = vmatprep.mubr.f32.mxu1 %v1407_v14  ;;  %2582 = vmatprep.mubr.f32.mxu0 %v1377_v2  ;;  %v1400_v21 = vld [vmem:[#allocation3 + $0x7b0] sm:$0xff]  ;;  %v1965_v23 = vadd.f32 %v4027_v7, %v4052_v37  ;;  %v1606_v61 = vpop.permute.xlu1 %1605 }
 0x230   :  { %2629 = vst.msk [vmem:[%s4329_s4 + $0x8] sm:$0xff] %vm40_vm0, %v2315_v35 }
 0x231   :  { %v2319_v29 = vpop.f32.mrb[44].mxu0  ;;  %v4045_v25 = vpop.f32.mrb[52].mxu1 }
 0x232   :  { %v2320_v31 = vadd.f32 %v2319_v29, %v1935_v26  ;;  %2238 = vmatmul.mubr.f32.gmra.mrb[158].mxu1 %v1406_v22  ;;  %v2321_v32 = vpop.f32.mrb[45].mxu0  ;;  %2583 = vmatmul.mubr.f32.gmra.mrb[150].mxu0 %v1376_v24  ;;  %v1976_v1 = vpop.f32.mrb[53].mxu1 }
 0x233   :  { %2587 = vmatprep.mubr.f32.mxu0 %v1381_v50  ;;  %2617 = vmatprep.mubr.f32.mxu1 %v1405_v16  ;;  %v1970_v16 = vadd.f32 %v4036_v20, %v1586_v47  ;;  %v1611_v29 = vpop.permute.xlu0 %1610 }
 0x234   :  { %2630 = vst.msk [vmem:[%s4329_s4 + $0x10] sm:$0xff] %vm40_vm0, %v2320_v31 }
 0x235   :  { %v2324_v18 = vpop.f32.mrb[46].mxu0  ;;  %v4054_v41 = vpop.f32.mrb[54].mxu1 }
 0x236   :  { %v2325_v40 = vadd.f32 %v2324_v18, %v1940_v36  ;;  %v2326_v44 = vpop.f32.mrb[47].mxu0  ;;  %2588 = vmatmul.mubr.f32.gmra.mrb[152].mxu0 %v1380_v28  ;;  %2618 = vmatmul.mubr.f32.vlgmr.msra.gmra.mrb[156].mxu1 %v1404_v34  ;;  %v1981_v45 = vpop.f32.mrb[55].mxu1  ;;  %v1975_v34 = vadd.f32 %v4045_v25, %v1591_v52 }
 0x237   :  { %2592 = vmatprep.mubr.f32.mxu0 %v1385_v38  ;;  %2622 = vmatprep.mubr.f32.mxu1 %v1409_v33  ;;  %v1616_v36 = vpop.permute.xlu1 %1615  ;;  %v1621_v44 = vpop.permute.xlu0 %1620 }
 0x238   :  { %2631 = vst.msk [vmem:[%s4329_s4 + $0x18] sm:$0xff] %vm40_vm0, %v2325_v40  ;;  %v1980_v40 = vadd.f32 %v4054_v41, %v1596_v30 }
 0x239   :  { %v2329_v51 = vpop.f32.mrb[48].mxu0  ;;  %v4062_v43 = vpop.f32.mrb[56].mxu1 }
 0x23a   :  { %v2330_v54 = vadd.f32 %v2329_v51, %v1945_v42  ;;  %v2331_v55 = vpop.f32.mrb[49].mxu0  ;;  %2593 = vmatmul.mubr.f32.gmra.mrb[154].mxu0 %v1384_v17  ;;  %2623 = vmatmul.mubr.f32.gmra.mrb[158].mxu1 %v1408_v46  ;;  %v1986_v56 = vpop.f32.mrb[57].mxu1 }
 0x23b   :  { %2597 = vmatprep.mubr.f32.mxu0 %v1389_v49  ;;  %v1626_v47 = vpop.permute.xlu1 %1625  ;;  %v1985_v49 = vadd.f32 %v4062_v43, %v1601_v48 }
 0x23c   :  { %2632 = vst.msk [vmem:[%s4329_s4 + $0x20] sm:$0xff] %vm40_vm0, %v2330_v54 }
 0x23d   :  { %v2334_v60 = vpop.f32.mrb[50].mxu0  ;;  %v4070_v62 = vpop.f32.mrb[58].mxu1 }
 0x23e   :  { %v2335_v53 = vadd.f32 %v2334_v60, %v1950_v39  ;;  %v2336_v58 = vpop.f32.mrb[51].mxu0  ;;  %2598 = vmatmul.mubr.f32.gmra.mrb[156].mxu0 %v1388_v57  ;;  %v1991_v63 = vpop.f32.mrb[59].mxu1  ;;  %v1990_v39 = vadd.f32 %v4070_v62, %v1606_v61 }
 0x23f   :  { %2602 = vmatprep.mubr.f32.mxu0 %v1393_v59  ;;  %v1631_v57 = vpop.permute.xlu0 %1630  ;;  %v1636_v58 = vpop.permute.xlu1 %1635 }
 0x240   :  { %2633 = vst.msk [vmem:[%s4329_s4 + $0x28] sm:$0xff] %vm40_vm0, %v2335_v53 }
 0x241   :  { %v2339_v5 = vpop.f32.mrb[52].mxu0  ;;  %v4078_v6 = vpop.f32.mrb[60].mxu1 }
 0x242   :  { %v2340_v9 = vadd.f32 %v2339_v5, %v1955_v0  ;;  %v2341_v10 = vpop.f32.mrb[53].mxu0  ;;  %2603 = vmatmul.mubr.f32.gmra.mrb[158].mxu0 %v1392_v4  ;;  %v1996_v11 = vpop.f32.mrb[61].mxu1  ;;  %v1995_v63 = vadd.f32 %v4078_v6, %v1611_v29 }
 0x243   :  { %2607 = vmatprep.mubr.f32.mxu0 %v1397_v3  ;;  %v1641_v5 = vpop.permute.xlu0 %1640  ;;  %v1646_v48 = vpop.permute.xlu1 %1645 }
 0x244   :  { %2634 = vst.msk [vmem:[%s4329_s4 + $0x30] sm:$0xff] %vm40_vm0, %v2340_v9 }
 0x245   :  { %v2344_v14 = vpop.f32.mrb[54].mxu0  ;;  %v4086_v2 = vpop.f32.mrb[62].mxu1 }
 0x246   :  { %v2345_v8 = vadd.f32 %v2344_v14, %v1960_v19  ;;  %v2346_v15 = vpop.f32.mrb[55].mxu0  ;;  %2608 = vmatmul.mubr.f32.gmra.mrb[160].mxu0 %v1396_v12  ;;  %v2001_v35 = vpop.f32.mrb[63].mxu1  ;;  %v2000_v9 = vadd.f32 %v4086_v2, %v1616_v36 }
 0x247   :  { %2612 = vmatprep.mubr.f32.mxu0 %v1401_v13 }
 0x248   :  { %2635 = vst.msk [vmem:[%s4329_s4 + $0x38] sm:$0xff] %vm40_vm0, %v2345_v8 }
 0x249   :  { %v2349_v22 = vpop.f32.mrb[56].mxu0  ;;  %v2004_v24 = vpop.f32.mrb[64].mxu1 }
 0x24a   :  { %v2350_v26 = vadd.f32 %v2349_v22, %v1965_v23  ;;  %v2351_v27 = vpop.f32.mrb[57].mxu0  ;;  %2613 = vmatmul.mubr.f32.gmra.mrb[162].mxu0 %v1400_v21  ;;  %v2006_v50 = vpop.f32.mrb[65].mxu1  ;;  %v2005_v13 = vadd.f32 %v2004_v24, %v1621_v44 }
 0x24b   :  { %v1651_v21 = vpop.permute.xlu0 %1650  ;;  %v1656_v50 = vpop.permute.xlu1 %1655 }
 0x24c   :  { %2636 = vst.msk [vmem:[%s4329_s4 + $0x40] sm:$0xff] %vm40_vm0, %v2350_v26 }
 0x24d   :  { %v2354_v7 = vpop.f32.mrb[58].mxu0  ;;  %v2009_v31 = vpop.f32.mrb[66].mxu1 }
 0x24e   :  { %v2355_v32 = vadd.f32 %v2354_v7, %v1970_v16  ;;  %v2356_v1 = vpop.f32.mrb[59].mxu0  ;;  %v2011_v28 = vpop.f32.mrb[67].mxu1  ;;  %v2010_v23 = vadd.f32 %v2009_v31, %v1626_v47 }
 0x24f   :  { %v1661_v28 = vpop.permute.xlu0 %1660 }
 0x250   :  { %2637 = vst.msk [vmem:[%s4329_s4 + $0x48] sm:$0xff] %vm40_vm0, %v2355_v32 }
 0x251   :  { %v2359_v20 = vpop.f32.mrb[60].mxu0  ;;  %v2014_v37 = vpop.f32.mrb[68].mxu1 }
 0x252   :  { %v2360_v38 = vadd.f32 %v2359_v20, %v1975_v34  ;;  %v2361_v33 = vpop.f32.mrb[61].mxu0  ;;  %v2016_v18 = vpop.f32.mrb[69].mxu1  ;;  %v2015_v16 = vadd.f32 %v2014_v37, %v1631_v57 }
 0x253   :  { %v1666_v18 = vpop.permute.xlu1 %1665 }
 0x254   :  { %2638 = vst.msk [vmem:[%s4329_s4 + $0x50] sm:$0xff] %vm40_vm0, %v2360_v38 }
 0x255   :  { %v2364_v25 = vpop.f32.mrb[62].mxu0  ;;  %v2019_v45 = vpop.f32.mrb[70].mxu1 }
 0x256   :  { %v2365_v17 = vadd.f32 %v2364_v25, %v1980_v40  ;;  %v2366_v46 = vpop.f32.mrb[63].mxu0  ;;  %v2021_v42 = vpop.f32.mrb[71].mxu1  ;;  %v2020_v34 = vadd.f32 %v2019_v45, %v1636_v58 }
 0x257   :  { %v1671_v42 = vpop.permute.xlu0 %1670 }
 0x258   :  { %2639 = vst.msk [vmem:[%s4329_s4 + $0x58] sm:$0xff] %vm40_vm0, %v2365_v17 }
 0x259   :  { %v2369_v41 = vpop.f32.mrb[64].mxu0  ;;  %v2024_v51 = vpop.f32.mrb[72].mxu1 }
 0x25a   :  { %v2370_v54 = vadd.f32 %v2369_v41, %v1985_v49  ;;  %v2371_v55 = vpop.f32.mrb[65].mxu0  ;;  %v2026_v56 = vpop.f32.mrb[73].mxu1  ;;  %v2025_v40 = vadd.f32 %v2024_v51, %v1641_v5 }
 0x25b   :  { %v1676_v56 = vpop.permute.xlu1 %1675 }
 0x25c   :  { %2640 = vst.msk [vmem:[%s4329_s4 + $0x60] sm:$0xff] %vm40_vm0, %v2370_v54 }
 0x25d   :  { %v2374_v52 = vpop.f32.mrb[66].mxu0  ;;  %v2029_v43 = vpop.f32.mrb[74].mxu1 }
 0x25e   :  { %v2375_v59 = vadd.f32 %v2374_v52, %v1990_v39  ;;  %v2376_v60 = vpop.f32.mrb[67].mxu0  ;;  %v2031_v53 = vpop.f32.mrb[75].mxu1  ;;  %v2030_v47 = vadd.f32 %v2029_v43, %v1646_v48 }
 0x25f   :  { %v1681_v53 = vpop.permute.xlu0 %1680 }
 0x260   :  { %2641 = vst.msk [vmem:[%s4329_s4 + $0x68] sm:$0xff] %vm40_vm0, %v2375_v59 }
 0x261   :  { %v2379_v4 = vpop.f32.mrb[68].mxu0  ;;  %v2034_v62 = vpop.f32.mrb[76].mxu1 }
 0x262   :  { %v2380_v0 = vadd.f32 %v2379_v4, %v1995_v63  ;;  %v2381_v30 = vpop.f32.mrb[69].mxu0  ;;  %v2036_v3 = vpop.f32.mrb[77].mxu1  ;;  %v2035_v57 = vadd.f32 %v2034_v62, %v1651_v21 }
 0x263   :  { %v1686_v3 = vpop.permute.xlu1 %1685 }
 0x264   :  { %2642 = vst.msk [vmem:[%s4329_s4 + $0x70] sm:$0xff] %vm40_vm0, %v2380_v0 }
 0x265   :  { %v2384_v10 = vpop.f32.mrb[70].mxu0  ;;  %v2039_v6 = vpop.f32.mrb[78].mxu1 }
 0x266   :  { %v2385_v11 = vadd.f32 %v2384_v10, %v2000_v9  ;;  %v2386_v12 = vpop.f32.mrb[71].mxu0  ;;  %v2041_v19 = vpop.f32.mrb[79].mxu1  ;;  %v2040_v58 = vadd.f32 %v2039_v6, %v1656_v50 }
 0x267   :  { %v1691_v19 = vpop.permute.xlu0 %1690 }
 0x268   :  { %2643 = vst.msk [vmem:[%s4329_s4 + $0x78] sm:$0xff] %vm40_vm0, %v2385_v11 }
 0x269   :  { %v2389_v14 = vpop.f32.mrb[72].mxu0  ;;  %v2044_v8 = vpop.f32.mrb[80].mxu1 }
 0x26a   :  { %v2390_v2 = vadd.f32 %v2389_v14, %v2005_v13  ;;  %v2391_v15 = vpop.f32.mrb[73].mxu0  ;;  %v2046_v35 = vpop.f32.mrb[81].mxu1  ;;  %v2045_v5 = vadd.f32 %v2044_v8, %v1661_v28 }
 0x26b   :  { %v1696_v35 = vpop.permute.xlu1 %1695 }
 0x26c   :  { %2644 = vst.msk [vmem:[%s4329_s4 + $0x80] sm:$0xff] %vm40_vm0, %v2390_v2 }
 0x26d   :  { %v2394_v61 = vpop.f32.mrb[74].mxu0  ;;  %v2049_v22 = vpop.f32.mrb[82].mxu1 }
 0x26e   :  { %v2395_v24 = vadd.f32 %v2394_v61, %v2010_v23  ;;  %v2396_v26 = vpop.f32.mrb[75].mxu0  ;;  %v2051_v27 = vpop.f32.mrb[83].mxu1  ;;  %v2050_v48 = vadd.f32 %v2049_v22, %v1666_v18 }
 0x26f   :  { %v1701_v27 = vpop.permute.xlu0 %1700 }
 0x270   :  { %2645 = vst.msk [vmem:[%s4329_s4 + $0x88] sm:$0xff] %vm40_vm0, %v2395_v24 }
 0x271   :  { %v2399_v29 = vpop.f32.mrb[76].mxu0  ;;  %v2054_v7 = vpop.f32.mrb[84].mxu1 }
 0x272   :  { %v2400_v31 = vadd.f32 %v2399_v29, %v2015_v16  ;;  %v2401_v32 = vpop.f32.mrb[77].mxu0  ;;  %v2056_v1 = vpop.f32.mrb[85].mxu1  ;;  %v2055_v21 = vadd.f32 %v2054_v7, %v1671_v42 }
 0x273   :  { %v1706_v1 = vpop.permute.xlu1 %1705 }
 0x274   :  { %2646 = vst.msk [vmem:[%s4329_s4 + $0x90] sm:$0xff] %vm40_vm0, %v2400_v31 }
 0x275   :  { %v2404_v36 = vpop.f32.mrb[78].mxu0  ;;  %v2059_v20 = vpop.f32.mrb[86].mxu1 }
 0x276   :  { %v2405_v37 = vadd.f32 %v2404_v36, %v2020_v34  ;;  %v2406_v38 = vpop.f32.mrb[79].mxu0  ;;  %v2061_v33 = vpop.f32.mrb[87].mxu1  ;;  %v2060_v50 = vadd.f32 %v2059_v20, %v1676_v56 }
 0x277   :  { %v1711_v33 = vpop.permute.xlu0 %1710 }
 0x278   :  { %2647 = vst.msk [vmem:[%s4329_s4 + $0x98] sm:$0xff] %vm40_vm0, %v2405_v37 }
 0x279   :  { %v2409_v44 = vpop.f32.mrb[80].mxu0  ;;  %v2064_v25 = vpop.f32.mrb[88].mxu1 }
 0x27a   :  { %v2410_v45 = vadd.f32 %v2409_v44, %v2025_v40  ;;  %v2411_v17 = vpop.f32.mrb[81].mxu0  ;;  %v2066_v46 = vpop.f32.mrb[89].mxu1  ;;  %v2065_v28 = vadd.f32 %v2064_v25, %v1681_v53 }
 0x27b   :  { %v1716_v46 = vpop.permute.xlu1 %1715 }
 0x27c   :  { %2648 = vst.msk [vmem:[%s4329_s4 + $0xa0] sm:$0xff] %vm40_vm0, %v2410_v45 }
 0x27d   :  { %v2414_v49 = vpop.f32.mrb[82].mxu0  ;;  %v2069_v41 = vpop.f32.mrb[90].mxu1 }
 0x27e   :  { %v2415_v51 = vadd.f32 %v2414_v49, %v2030_v47  ;;  %v2416_v54 = vpop.f32.mrb[83].mxu0  ;;  %v2071_v55 = vpop.f32.mrb[91].mxu1  ;;  %v2070_v18 = vadd.f32 %v2069_v41, %v1686_v3 }
 0x27f   :  { %v1721_v55 = vpop.permute.xlu0 %1720 }
 0x280   :  { %2649 = vst.msk [vmem:[%s4329_s4 + $0xa8] sm:$0xff] %vm40_vm0, %v2415_v51 }
 0x281   :  { %v2419_v39 = vpop.f32.mrb[84].mxu0  ;;  %v2074_v52 = vpop.f32.mrb[92].mxu1 }
 0x282   :  { %v2420_v43 = vadd.f32 %v2419_v39, %v2035_v57  ;;  %v2421_v59 = vpop.f32.mrb[85].mxu0  ;;  %v2076_v60 = vpop.f32.mrb[93].mxu1  ;;  %v2075_v42 = vadd.f32 %v2074_v52, %v1691_v19 }
 0x283   :  { %v1726_v60 = vpop.permute.xlu1 %1725 }
 0x284   :  { %2650 = vst.msk [vmem:[%s4329_s4 + $0xb0] sm:$0xff] %vm40_vm0, %v2420_v43 }
 0x285   :  { %v2424_v63 = vpop.f32.mrb[86].mxu0  ;;  %v2079_v4 = vpop.f32.mrb[94].mxu1 }
 0x286   :  { %v2425_v62 = vadd.f32 %v2424_v63, %v2040_v58  ;;  %v2426_v0 = vpop.f32.mrb[87].mxu0  ;;  %v2081_v30 = vpop.f32.mrb[95].mxu1  ;;  %v2080_v56 = vadd.f32 %v2079_v4, %v1696_v35 }
 0x287   :  { %v1731_v30 = vpop.permute.xlu0 %1730 }
 0x288   :  { %2651 = vst.msk [vmem:[%s4329_s4 + $0xb8] sm:$0xff] %vm40_vm0, %v2425_v62 }
 0x289   :  { %v2429_v9 = vpop.f32.mrb[88].mxu0  ;;  %v2084_v10 = vpop.f32.mrb[96].mxu1 }
 0x28a   :  { %v2430_v6 = vadd.f32 %v2429_v9, %v2045_v5  ;;  %v2431_v11 = vpop.f32.mrb[89].mxu0  ;;  %v2086_v12 = vpop.f32.mrb[97].mxu1  ;;  %v2085_v53 = vadd.f32 %v2084_v10, %v1701_v27 }
 0x28b   :  { %v1736_v12 = vpop.permute.xlu1 %1735 }
 0x28c   :  { %2652 = vst.msk [vmem:[%s4329_s4 + $0xc0] sm:$0xff] %vm40_vm0, %v2430_v6 }
 0x28d   :  { %v2434_v13 = vpop.f32.mrb[90].mxu0  ;;  %v2089_v14 = vpop.f32.mrb[98].mxu1 }
 0x28e   :  { %v2435_v8 = vadd.f32 %v2434_v13, %v2050_v48  ;;  %v2436_v2 = vpop.f32.mrb[91].mxu0  ;;  %v2091_v15 = vpop.f32.mrb[99].mxu1  ;;  %v2090_v3 = vadd.f32 %v2089_v14, %v1706_v1 }
 0x28f   :  { %v1741_v15 = vpop.permute.xlu0 %1740 }
 0x290   :  { %2653 = vst.msk [vmem:[%s4329_s4 + $0xc8] sm:$0xff] %vm40_vm0, %v2435_v8 }
 0x291   :  { %v2439_v23 = vpop.f32.mrb[92].mxu0  ;;  %v2094_v61 = vpop.f32.mrb[100].mxu1 }
 0x292   :  { %v2440_v22 = vadd.f32 %v2439_v23, %v2055_v21  ;;  %v2441_v24 = vpop.f32.mrb[93].mxu0  ;;  %v2096_v26 = vpop.f32.mrb[101].mxu1  ;;  %v2095_v19 = vadd.f32 %v2094_v61, %v1711_v33 }
 0x293   :  { %v1746_v26 = vpop.permute.xlu1 %1745 }
 0x294   :  { %2654 = vst.msk [vmem:[%s4329_s4 + $0xd0] sm:$0xff] %vm40_vm0, %v2440_v22 }
 0x295   :  { %v2444_v16 = vpop.f32.mrb[94].mxu0  ;;  %v2099_v29 = vpop.f32.mrb[102].mxu1 }
 0x296   :  { %v2445_v7 = vadd.f32 %v2444_v16, %v2060_v50  ;;  %v2446_v31 = vpop.f32.mrb[95].mxu0  ;;  %v2101_v32 = vpop.f32.mrb[103].mxu1  ;;  %v2100_v35 = vadd.f32 %v2099_v29, %v1716_v46 }
 0x297   :  { %v1751_v32 = vpop.permute.xlu0 %1750 }
 0x298   :  { %2655 = vst.msk [vmem:[%s4329_s4 + $0xd8] sm:$0xff] %vm40_vm0, %v2445_v7 }
 0x299   :  { %v2449_v34 = vpop.f32.mrb[96].mxu0  ;;  %v2104_v36 = vpop.f32.mrb[104].mxu1 }
 0x29a   :  { %v2450_v20 = vadd.f32 %v2449_v34, %v2065_v28  ;;  %v2451_v37 = vpop.f32.mrb[97].mxu0  ;;  %v2106_v38 = vpop.f32.mrb[105].mxu1  ;;  %v2105_v27 = vadd.f32 %v2104_v36, %v1721_v55 }
 0x29b   :  { %v1756_v38 = vpop.permute.xlu1 %1755 }
 0x29c   :  { %2656 = vst.msk [vmem:[%s4329_s4 + $0xe0] sm:$0xff] %vm40_vm0, %v2450_v20 }
 0x29d   :  { %v2454_v40 = vpop.f32.mrb[98].mxu0  ;;  %v2109_v44 = vpop.f32.mrb[106].mxu1 }
 0x29e   :  { %v2455_v25 = vadd.f32 %v2454_v40, %v2070_v18  ;;  %v2456_v45 = vpop.f32.mrb[99].mxu0  ;;  %v2111_v17 = vpop.f32.mrb[107].mxu1  ;;  %v2110_v1 = vadd.f32 %v2109_v44, %v1726_v60 }
 0x29f   :  { %v1761_v17 = vpop.permute.xlu0 %1760 }
 0x2a0   :  { %2657 = vst.msk [vmem:[%s4329_s4 + $0xe8] sm:$0xff] %vm40_vm0, %v2455_v25 }
 0x2a1   :  { %v2459_v47 = vpop.f32.mrb[100].mxu0  ;;  %v2114_v49 = vpop.f32.mrb[108].mxu1 }
 0x2a2   :  { %v2460_v41 = vadd.f32 %v2459_v47, %v2075_v42  ;;  %v2461_v51 = vpop.f32.mrb[101].mxu0  ;;  %v2116_v54 = vpop.f32.mrb[109].mxu1  ;;  %v2115_v33 = vadd.f32 %v2114_v49, %v1731_v30 }
 0x2a3   :  { %v1766_v54 = vpop.permute.xlu1 %1765 }
 0x2a4   :  { %2658 = vst.msk [vmem:[%s4329_s4 + $0xf0] sm:$0xff] %vm40_vm0, %v2460_v41 }
 0x2a5   :  { %v2119_v57 = vpop.f32.mrb[110].mxu1  ;;  %v2464_v39 = vpop.f32.mrb[102].mxu0 }
 0x2a6   :  { %v2465_v52 = vadd.f32 %v2464_v39, %v2080_v56  ;;  %v2466_v43 = vpop.f32.mrb[103].mxu0  ;;  %v2121_v59 = vpop.f32.mrb[111].mxu1  ;;  %v2120_v46 = vadd.f32 %v2119_v57, %v1736_v12 }
 0x2a7   :  { %v1771_v59 = vpop.permute.xlu0 %1770 }
 0x2a8   :  { %2659 = vst.msk [vmem:[%s4329_s4 + $0xf8] sm:$0xff] %vm40_vm0, %v2465_v52 }
 0x2a9   :  { %v2124_v58 = vpop.f32.mrb[112].mxu1  ;;  %v2469_v63 = vpop.f32.mrb[104].mxu0 }
 0x2aa   :  { %v2470_v4 = vadd.f32 %v2469_v63, %v2085_v53  ;;  %v2471_v62 = vpop.f32.mrb[105].mxu0  ;;  %v2126_v0 = vpop.f32.mrb[113].mxu1  ;;  %v2125_v55 = vadd.f32 %v2124_v58, %v1741_v15 }
 0x2ab   :  { %v1776_v0 = vpop.permute.xlu1 %1775 }
 0x2ac   :  { %2660 = vst.msk [vmem:[%s4329_s4 + $0x100] sm:$0xff] %vm40_vm0, %v2470_v4 }
 0x2ad   :  { %v2129_v5 = vpop.f32.mrb[114].mxu1  ;;  %v2474_v9 = vpop.f32.mrb[106].mxu0 }
 0x2ae   :  { %v2475_v10 = vadd.f32 %v2474_v9, %v2090_v3  ;;  %v2476_v6 = vpop.f32.mrb[107].mxu0  ;;  %v2131_v11 = vpop.f32.mrb[115].mxu1  ;;  %v2130_v60 = vadd.f32 %v2129_v5, %v1746_v26 }
 0x2af   :  { %v1781_v11 = vpop.permute.xlu0 %1780 }
 0x2b0   :  { %2661 = vst.msk [vmem:[%s4329_s4 + $0x108] sm:$0xff] %vm40_vm0, %v2475_v10 }
 0x2b1   :  { %v2134_v48 = vpop.f32.mrb[116].mxu1  ;;  %v2479_v13 = vpop.f32.mrb[108].mxu0 }
 0x2b2   :  { %v2480_v14 = vadd.f32 %v2479_v13, %v2095_v19  ;;  %v2481_v8 = vpop.f32.mrb[109].mxu0  ;;  %v2136_v2 = vpop.f32.mrb[117].mxu1  ;;  %v2135_v30 = vadd.f32 %v2134_v48, %v1751_v32 }
 0x2b3   :  { %v1786_v2 = vpop.permute.xlu1 %1785 }
 0x2b4   :  { %2662 = vst.msk [vmem:[%s4329_s4 + $0x110] sm:$0xff] %vm40_vm0, %v2480_v14 }
 0x2b5   :  { %v2139_v21 = vpop.f32.mrb[118].mxu1  ;;  %v2484_v23 = vpop.f32.mrb[110].mxu0 }
 0x2b6   :  { %v2485_v61 = vadd.f32 %v2484_v23, %v2100_v35  ;;  %v2486_v22 = vpop.f32.mrb[111].mxu0  ;;  %v2141_v24 = vpop.f32.mrb[119].mxu1  ;;  %v2140_v12 = vadd.f32 %v2139_v21, %v1756_v38 }
 0x2b7   :  { %v1791_v24 = vpop.permute.xlu0 %1790 }
 0x2b8   :  { %2663 = vst.msk [vmem:[%s4329_s4 + $0x118] sm:$0xff] %vm40_vm0, %v2485_v61 }
 0x2b9   :  { %v2144_v50 = vpop.f32.mrb[120].mxu1  ;;  %v2489_v16 = vpop.f32.mrb[112].mxu0 }
 0x2ba   :  { %v2490_v29 = vadd.f32 %v2489_v16, %v2105_v27  ;;  %v2491_v7 = vpop.f32.mrb[113].mxu0  ;;  %v2146_v31 = vpop.f32.mrb[121].mxu1  ;;  %v2145_v15 = vadd.f32 %v2144_v50, %v1761_v17 }
 0x2bb   :  { %v1796_v31 = vpop.permute.xlu1 %1795 }
 0x2bc   :  { %2664 = vst.msk [vmem:[%s4329_s4 + $0x120] sm:$0xff] %vm40_vm0, %v2490_v29 }
 0x2bd   :  { %v2149_v28 = vpop.f32.mrb[122].mxu1  ;;  %v2494_v34 = vpop.f32.mrb[114].mxu0 }
 0x2be   :  { %v2495_v36 = vadd.f32 %v2494_v34, %v2110_v1  ;;  %v2496_v20 = vpop.f32.mrb[115].mxu0  ;;  %v2151_v37 = vpop.f32.mrb[123].mxu1  ;;  %v2150_v26 = vadd.f32 %v2149_v28, %v1766_v54 }
 0x2bf   :  { %v1801_v37 = vpop.permute.xlu0 %1800 }
 0x2c0   :  { %2665 = vst.msk [vmem:[%s4329_s4 + $0x128] sm:$0xff] %vm40_vm0, %v2495_v36 }
 0x2c1   :  { %v2154_v18 = vpop.f32.mrb[124].mxu1  ;;  %v2499_v40 = vpop.f32.mrb[116].mxu0 }
 0x2c2   :  { %v2500_v44 = vadd.f32 %v2499_v40, %v2115_v33  ;;  %v2501_v25 = vpop.f32.mrb[117].mxu0  ;;  %v2156_v45 = vpop.f32.mrb[125].mxu1  ;;  %v2155_v32 = vadd.f32 %v2154_v18, %v1771_v59 }
 0x2c3   :  { %v1806_v45 = vpop.permute.xlu1 %1805 }
 0x2c4   :  { %2666 = vst.msk [vmem:[%s4329_s4 + $0x130] sm:$0xff] %vm40_vm0, %v2500_v44 }
 0x2c5   :  { %v2159_v42 = vpop.f32.mrb[126].mxu1  ;;  %v2504_v47 = vpop.f32.mrb[118].mxu0 }
 0x2c6   :  { %v2505_v49 = vadd.f32 %v2504_v47, %v2120_v46  ;;  %v2506_v41 = vpop.f32.mrb[119].mxu0  ;;  %v2161_v51 = vpop.f32.mrb[127].mxu1  ;;  %v2160_v38 = vadd.f32 %v2159_v42, %v1776_v0 }
 0x2c7   :  { %v1811_v51 = vpop.permute.xlu0 %1810 }
 0x2c8   :  { %2667 = vst.msk [vmem:[%s4329_s4 + $0x138] sm:$0xff] %vm40_vm0, %v2505_v49 }
 0x2c9   :  { %v2164_v56 = vpop.f32.mrb[128].mxu1  ;;  %v2509_v39 = vpop.f32.mrb[120].mxu0 }
 0x2ca   :  { %v2510_v57 = vadd.f32 %v2509_v39, %v2125_v55  ;;  %v2511_v52 = vpop.f32.mrb[121].mxu0  ;;  %v2166_v43 = vpop.f32.mrb[129].mxu1  ;;  %v2165_v17 = vadd.f32 %v2164_v56, %v1781_v11 }
 0x2cb   :  { %v1816_v43 = vpop.permute.xlu1 %1815 }
 0x2cc   :  { %2668 = vst.msk [vmem:[%s4329_s4 + $0x140] sm:$0xff] %vm40_vm0, %v2510_v57 }
 0x2cd   :  { %v2169_v53 = vpop.f32.mrb[130].mxu1  ;;  %v2514_v63 = vpop.f32.mrb[122].mxu0 }
 0x2ce   :  { %v2515_v58 = vadd.f32 %v2514_v63, %v2130_v60  ;;  %v2516_v4 = vpop.f32.mrb[123].mxu0  ;;  %v2171_v62 = vpop.f32.mrb[131].mxu1  ;;  %v2170_v54 = vadd.f32 %v2169_v53, %v1786_v2 }
 0x2cf   :  { %v1821_v62 = vpop.permute.xlu0 %1820 }
 0x2d0   :  { %2669 = vst.msk [vmem:[%s4329_s4 + $0x148] sm:$0xff] %vm40_vm0, %v2515_v58 }
 0x2d1   :  { %v2174_v3 = vpop.f32.mrb[132].mxu1  ;;  %v2519_v9 = vpop.f32.mrb[124].mxu0 }
 0x2d2   :  { %v2520_v5 = vadd.f32 %v2519_v9, %v2135_v30  ;;  %v2521_v10 = vpop.f32.mrb[125].mxu0  ;;  %v2176_v6 = vpop.f32.mrb[133].mxu1  ;;  %v2175_v59 = vadd.f32 %v2174_v3, %v1791_v24 }
 0x2d3   :  { %v1826_v6 = vpop.permute.xlu1 %1825 }
 0x2d4   :  { %2670 = vst.msk [vmem:[%s4329_s4 + $0x150] sm:$0xff] %vm40_vm0, %v2520_v5 }
 0x2d5   :  { %v2179_v19 = vpop.f32.mrb[134].mxu1  ;;  %v2524_v13 = vpop.f32.mrb[126].mxu0 }
 0x2d6   :  { %v2525_v48 = vadd.f32 %v2524_v13, %v2140_v12  ;;  %v2526_v14 = vpop.f32.mrb[127].mxu0  ;;  %v2181_v8 = vpop.f32.mrb[135].mxu1  ;;  %v2180_v0 = vadd.f32 %v2179_v19, %v1796_v31 }
 0x2d7   :  { %v1831_v8 = vpop.permute.xlu0 %1830 }
 0x2d8   :  { %2671 = vst.msk [vmem:[%s4329_s4 + $0x158] sm:$0xff] %vm40_vm0, %v2525_v48 }
 0x2d9   :  { %v2184_v35 = vpop.f32.mrb[136].mxu1  ;;  %v2529_v23 = vpop.f32.mrb[128].mxu0 }
 0x2da   :  { %v2530_v21 = vadd.f32 %v2529_v23, %v2145_v15  ;;  %v2531_v61 = vpop.f32.mrb[129].mxu0  ;;  %v2186_v22 = vpop.f32.mrb[137].mxu1  ;;  %v2185_v11 = vadd.f32 %v2184_v35, %v1801_v37 }
 0x2db   :  { %v1836_v22 = vpop.permute.xlu1 %1835 }
 0x2dc   :  { %2672 = vst.msk [vmem:[%s4329_s4 + $0x160] sm:$0xff] %vm40_vm0, %v2530_v21 }
 0x2dd   :  { %v2189_v27 = vpop.f32.mrb[138].mxu1  ;;  %v2534_v16 = vpop.f32.mrb[130].mxu0 }
 0x2de   :  { %v2535_v50 = vadd.f32 %v2534_v16, %v2150_v26  ;;  %v2536_v29 = vpop.f32.mrb[131].mxu0  ;;  %v2191_v7 = vpop.f32.mrb[139].mxu1  ;;  %v2190_v2 = vadd.f32 %v2189_v27, %v1806_v45 }
 0x2df   :  { %v1841_v16 = vpop.permute.xlu0 %1840  ;;  %v1846_v31 = vpop.permute.xlu1 %1845 }
 0x2e0   :  { %2673 = vst.msk [vmem:[%s4329_s4 + $0x168] sm:$0xff] %vm40_vm0, %v2535_v50 }
 0x2e1   :  { %v2194_v1 = vpop.f32.mrb[140].mxu1  ;;  %v2539_v34 = vpop.f32.mrb[132].mxu0 }
 0x2e2   :  { %v2540_v28 = vadd.f32 %v2539_v34, %v2155_v32  ;;  %v2541_v36 = vpop.f32.mrb[133].mxu0  ;;  %v2196_v20 = vpop.f32.mrb[141].mxu1  ;;  %v2195_v24 = vadd.f32 %v2194_v1, %v1811_v51 }
 0x2e3   :  { %v1851_v1 = vpop.permute.xlu0 %1850 }
 0x2e4   :  { %2674 = vst.msk [vmem:[%s4329_s4 + $0x170] sm:$0xff] %vm40_vm0, %v2540_v28 }
 0x2e5   :  { %v2199_v33 = vpop.f32.mrb[142].mxu1  ;;  %v2544_v40 = vpop.f32.mrb[134].mxu0 }
 0x2e6   :  { %v2545_v18 = vadd.f32 %v2544_v40, %v2160_v38  ;;  %v2546_v44 = vpop.f32.mrb[135].mxu0  ;;  %v2201_v25 = vpop.f32.mrb[143].mxu1  ;;  %v2200_v29 = vadd.f32 %v2199_v33, %v1816_v43 }
 0x2e8   :  { %2675 = vst.msk [vmem:[%s4329_s4 + $0x178] sm:$0xff] %vm40_vm0, %v2545_v18  ;;  %v1856_v18 = vpop.permute.xlu1 %1855 }
 0x2e9   :  { %v2204_v46 = vpop.f32.mrb[144].mxu1  ;;  %v2549_v47 = vpop.f32.mrb[136].mxu0 }
 0x2ea   :  { %v2550_v42 = vadd.f32 %v2549_v47, %v2165_v17  ;;  %v2551_v49 = vpop.f32.mrb[137].mxu0  ;;  %v2206_v41 = vpop.f32.mrb[145].mxu1  ;;  %v2205_v28 = vadd.f32 %v2204_v46, %v1821_v62 }
 0x2ec   :  { %2676 = vst.msk [vmem:[%s4329_s4 + $0x180] sm:$0xff] %vm40_vm0, %v2550_v42 }
 0x2ed   :  { %v2209_v55 = vpop.f32.mrb[146].mxu1  ;;  %v2554_v39 = vpop.f32.mrb[138].mxu0 }
 0x2ee   :  { %v2555_v56 = vadd.f32 %v2554_v39, %v2170_v54  ;;  %v2556_v57 = vpop.f32.mrb[139].mxu0  ;;  %v2211_v52 = vpop.f32.mrb[147].mxu1  ;;  %v2210_v44 = vadd.f32 %v2209_v55, %v1826_v6 }
 0x2f0   :  { %2677 = vst.msk [vmem:[%s4329_s4 + $0x188] sm:$0xff] %vm40_vm0, %v2555_v56 }
 0x2f1   :  { %v2214_v60 = vpop.f32.mrb[148].mxu1  ;;  %v2559_v63 = vpop.f32.mrb[140].mxu0 }
 0x2f2   :  { %v2560_v53 = vadd.f32 %v2559_v63, %v2175_v59  ;;  %v2561_v58 = vpop.f32.mrb[141].mxu0  ;;  %v2216_v4 = vpop.f32.mrb[149].mxu1  ;;  %v2215_v49 = vadd.f32 %v2214_v60, %v1831_v8 }
 0x2f4   :  { %2678 = vst.msk [vmem:[%s4329_s4 + $0x190] sm:$0xff] %vm40_vm0, %v2560_v53 }
 0x2f5   :  { %v2219_v30 = vpop.f32.mrb[150].mxu1  ;;  %v2564_v9 = vpop.f32.mrb[142].mxu0 }
 0x2f6   :  { %v2565_v3 = vadd.f32 %v2564_v9, %v2180_v0  ;;  %v2566_v5 = vpop.f32.mrb[143].mxu0  ;;  %v2221_v10 = vpop.f32.mrb[151].mxu1  ;;  %v2220_v55 = vadd.f32 %v2219_v30, %v1836_v22 }
 0x2f8   :  { %2679 = vst.msk [vmem:[%s4329_s4 + $0x198] sm:$0xff] %vm40_vm0, %v2565_v3 }
 0x2f9   :  { %v2224_v12 = vpop.f32.mrb[152].mxu1  ;;  %v2569_v13 = vpop.f32.mrb[144].mxu0 }
 0x2fa   :  { %v2570_v19 = vadd.f32 %v2569_v13, %v2185_v11  ;;  %v2571_v48 = vpop.f32.mrb[145].mxu0  ;;  %v2226_v14 = vpop.f32.mrb[153].mxu1  ;;  %v2225_v52 = vadd.f32 %v2224_v12, %v1841_v16 }
 0x2fc   :  { %2680 = vst.msk [vmem:[%s4329_s4 + $0x1a0] sm:$0xff] %vm40_vm0, %v2570_v19 }
 0x2fd   :  { %v2229_v15 = vpop.f32.mrb[154].mxu1  ;;  %v2574_v23 = vpop.f32.mrb[146].mxu0 }
 0x2fe   :  { %v2575_v35 = vadd.f32 %v2574_v23, %v2190_v2  ;;  %v2576_v21 = vpop.f32.mrb[147].mxu0  ;;  %v2231_v61 = vpop.f32.mrb[155].mxu1  ;;  %v2230_v63 = vadd.f32 %v2229_v15, %v1846_v31 }
 0x300   :  { %2681 = vst.msk [vmem:[%s4329_s4 + $0x1a8] sm:$0xff] %vm40_vm0, %v2575_v35 }
 0x301   :  { %v2579_v26 = vpop.f32.mrb[148].mxu0 }
 0x302   :  { %v2580_v27 = vadd.f32 %v2579_v26, %v2195_v24  ;;  %v2581_v50 = vpop.f32.mrb[149].mxu0 }
 0x304   :  { %2682 = vst.msk [vmem:[%s4329_s4 + $0x1b0] sm:$0xff] %vm40_vm0, %v2580_v27 }
 0x305   :  { %v2584_v7 = vpop.f32.mrb[150].mxu0 }
 0x306   :  { %v2585_v32 = vadd.f32 %v2584_v7, %v2200_v29  ;;  %v2586_v34 = vpop.f32.mrb[151].mxu0 }
 0x308   :  { %2683 = vst.msk [vmem:[%s4329_s4 + $0x1b8] sm:$0xff] %vm40_vm0, %v2585_v32 }
 0x309   :  { %v2589_v36 = vpop.f32.mrb[152].mxu0  ;;  %v2619_v20 = vpop.f32.mrb[156].mxu1 }
 0x30a   :  { %v2590_v37 = vadd.f32 %v2589_v36, %v2205_v28  ;;  %v3236_v38 = vadd.f32 %v2619_v20, %v1851_v1  ;;  %v2591_v33 = vpop.f32.mrb[153].mxu0  ;;  %v2621_v40 = vpop.f32.mrb[157].mxu1 }
 0x30c   :  { %2684 = vst.msk [vmem:[%s4329_s4 + $0x1c0] sm:$0xff] %vm40_vm0, %v2590_v37  ;;  %2690 = vst.msk [vmem:[%s4329_s4 + $0x1f0] sm:$0xff] %vm40_vm0, %v3236_v38 }
 0x30d   :  { %v2594_v25 = vpop.f32.mrb[154].mxu0  ;;  %v2624_v45 = vpop.f32.mrb[158].mxu1 }
 0x30e   :  { %v2595_v17 = vadd.f32 %v2594_v25, %v2210_v44  ;;  %v3237_v46 = vadd.f32 %v2624_v45, %v1856_v18  ;;  %v2596_v47 = vpop.f32.mrb[155].mxu0  ;;  %v2626_v42 = vpop.f32.mrb[159].mxu1 }
 0x310   :  { %2685 = vst.msk [vmem:[%s4329_s4 + $0x1c8] sm:$0xff] %vm40_vm0, %v2595_v17  ;;  %2691 = vst.msk [vmem:[%s4329_s4 + $0x1f8] sm:$0xff] %vm40_vm0, %v3237_v46 }
 0x311   :  { %v2599_v41 = vpop.f32.mrb[156].mxu0 }
 0x312   :  { %v2600_v51 = vadd.f32 %v2599_v41, %v2215_v49  ;;  %v2601_v54 = vpop.f32.mrb[157].mxu0 }
 0x314   :  { %2686 = vst.msk [vmem:[%s4329_s4 + $0x1d0] sm:$0xff] %vm40_vm0, %v2600_v51 }
 0x315   :  { %v2604_v39 = vpop.f32.mrb[158].mxu0 }
 0x316   :  { %v2605_v56 = vadd.f32 %v2604_v39, %v2220_v55  ;;  %v2606_v57 = vpop.f32.mrb[159].mxu0 }
 0x318   :  { %2687 = vst.msk [vmem:[%s4329_s4 + $0x1d8] sm:$0xff] %vm40_vm0, %v2605_v56 }
 0x319   :  { %v2609_v43 = vpop.f32.mrb[160].mxu0 }
 0x31a   :  { %v2610_v59 = vadd.f32 %v2609_v43, %v2225_v52  ;;  %v2611_v60 = vpop.f32.mrb[161].mxu0 }
 0x31c   :  { %2688 = vst.msk [vmem:[%s4329_s4 + $0x1e0] sm:$0xff] %vm40_vm0, %v2610_v59 }
 0x31d   :  { %v2614_v53 = vpop.f32.mrb[162].mxu0 }
 0x31e   :  { %v2615_v58 = vadd.f32 %v2614_v53, %v2230_v63  ;;  %v2616_v4 = vpop.f32.mrb[163].mxu0 }
 0x320   :  { %2689 = vst.msk [vmem:[%s4329_s4 + $0x1e8] sm:$0xff] %vm40_vm0, %v2615_v58 }
 0x321   :  { %2696 = vsyncpa [#allocation4], 1 }

</bundles_post_ra>
